<compile_context>
chip_gen: v5e
topology: v5e:2x2
jax: 0.10.0
libtpu: 0.0.40
codegen_flags: <defaults>
</compile_context>

<pallas_src>
import functools

import jax
import jax.numpy as jnp
from jax import lax
from jax.experimental import pallas as pl
from jax.experimental.pallas import tpu as pltpu


_INV_SQRT2 = 0.7071067811865476


def _gelu(v, approximate):
    if approximate:
        return jax.nn.gelu(v, approximate=True)       # tanh form (EUP-friendly)
    # torch.nn.GELU() default = exact erf formulation (computed in f32).
    return 0.5 * v * (1.0 + lax.erf(v * _INV_SQRT2))


def _round_up(v, m):
    return ((v + m - 1) // m) * m


def _vmem_capacity_bytes():
    """Physical VMEM of the current chip; conservative 64 MiB if unknown."""
    try:
        cap = getattr(pltpu.get_tpu_info(), "vmem_capacity_bytes", None)
        if cap:
            return int(cap)
    except Exception:
        pass
    return 64 * 1024 * 1024


def _block_footprint_bytes(bt, n, d, h, x_itemsize, c_itemsize):
    """Rough per-grid-step VMEM footprint for block_b = bt (padded dims)."""
    rows = bt * n
    weights = 2 * (h * n + n * h + d * h + h * d) * c_itemsize   # double-buffered consts
    biases = 2 * (h + n + h + d) * 4
    xio = 2 * 2 * rows * d * x_itemsize                          # in + out, double-buffered
    # f32 intermediates: token hidden (h,d) + per-slab t (n,d), x1 scratch,
    # channel hidden (rows,h), channel out (rows,d).
    acts = (h * d + n * d + 2 * rows * d + rows * h + rows * d) * 4
    return weights + biases + xio + acts


def _choose_block_b(batch, n, d, h, x_itemsize, c_itemsize, vmem_cap, *, max_unroll=8):
    """Largest batch-block that (a) divides B, (b) fits the chip's VMEM budget,
    (c) keeps >= 2 grid steps for the two v7x TensorCores, (d) bounds the
    in-kernel unroll, preferring the smallest block reaching `target_rows`."""
    target_rows = 512 if vmem_cap >= (96 << 20) else 256
    budget = int(vmem_cap * 0.45)
    max_bt = batch if batch == 1 else max(1, batch // 2)   # >= 2 grid steps when B >= 2
    max_bt = min(max_bt, max_unroll)
    best = 1
    for bt in range(1, max_bt + 1):
        if batch % bt:
            continue
        if bt > 1 and _block_footprint_bytes(bt, n, d, h, x_itemsize, c_itemsize) > budget:
            break
        best = bt
        if bt * n >= target_rows:
            break
    return best


def _mixer_kernel(x_ref, w1t_ref, b1t_ref, w2t_ref, b2t_ref,
                  w1c_ref, b1c_ref, w2c_ref, b2c_ref, o_ref, x1_ref,
                  *, block_b, num_tokens, compute_dtype, approximate_gelu):
    n = num_tokens

    def to_cd(v):
        return v if v.dtype == compute_dtype else v.astype(compute_dtype)

    # Token-mixing weights/biases: read once, reused across the per-batch loop.
    w1t = w1t_ref[...]            # (Hp, Np)  compute_dtype
    b1t = b1t_ref[...]            # (Hp, 1)   f32
    w2t = w2t_ref[...]            # (Np, Hp)  compute_dtype
    b2t = b2t_ref[...]            # (Np, 1)   f32

    # ---- token-mixing MLP: D stays on the lane axis, no transposes ----------
    # Per batch element b:  t_b = W2t @ gelu(W1t @ x_b + b1t) + b2t
    for b in range(block_b):      # static unroll, block_b <= 8
        sl = slice(b * n, (b + 1) * n)
        xb = x_ref[sl, :]                                                  # (Np, Dp)
        hb = jnp.dot(w1t, to_cd(xb), preferred_element_type=jnp.float32) + b1t
        hb = _gelu(hb, approximate_gelu)                                   # (Hp, Dp) f32
        tb = jnp.dot(w2t, to_cd(hb), preferred_element_type=jnp.float32) + b2t
        x1_ref[sl, :] = xb.astype(jnp.float32) + tb                        # residual, f32

    # ---- channel-mixing MLP: one large-M matmul over all block rows ---------
    x1 = x1_ref[...]                                                       # (rows, Dp) f32
    h2 = jnp.dot(to_cd(x1), w1c_ref[...],
                 preferred_element_type=jnp.float32) + b1c_ref[...]        # (rows, Hp)
    h2 = _gelu(h2, approximate_gelu)
    c = jnp.dot(to_cd(h2), w2c_ref[...],
                preferred_element_type=jnp.float32) + b2c_ref[...]         # (rows, Dp)

    o_ref[...] = (x1 + c).astype(o_ref.dtype)


def _const_index_map(ndim):
    def index_map(i):
        return (0,) * ndim
    return index_map


def _run_mixer(x2d, kparams, *, batch, block_b, num_tokens, dim_p,
               compute_dtype, approximate_gelu, vmem_limit):
    n, d = num_tokens, dim_p
    rows = block_b * n
    grid = (batch // block_b,)

    kernel = functools.partial(_mixer_kernel, block_b=block_b, num_tokens=n,
                               compute_dtype=compute_dtype,
                               approximate_gelu=approximate_gelu)

    return pl.pallas_call(
        kernel,
        out_shape=jax.ShapeDtypeStruct(x2d.shape, x2d.dtype),
        grid_spec=pltpu.PrefetchScalarGridSpec(
            num_scalar_prefetch=0,
            grid=grid,
            in_specs=[pl.BlockSpec((rows, d), lambda i: (i, 0))]
                     + [pl.BlockSpec(a.shape, _const_index_map(a.ndim)) for a in kparams],
            out_specs=pl.BlockSpec((rows, d), lambda i: (i, 0)),
            scratch_shapes=[pltpu.VMEM((rows, d), jnp.float32)],   # x1 (residual) scratch
        ),
        compiler_params=pltpu.CompilerParams(
            dimension_semantics=("parallel",),
            vmem_limit_bytes=vmem_limit),
    )(x2d, *kparams)


def mlp_mixer_layer(x, token_w1, token_b1, token_w2, token_b2,
                    chan_w1, chan_b1, chan_w2, chan_b2,
                    *, compute_dtype=jnp.bfloat16, block_b=None,
                    approximate_gelu=False, pad_lanes=True):
    """Forward pass of MLPMixerLayer.

    x: (B, N, D).  Weights/biases use PyTorch nn.Linear layout:
      token_w1 (H, N), token_b1 (H,), token_w2 (N, H), token_b2 (N,)
      chan_w1  (H, D), chan_b1  (H,), chan_w2  (D, H), chan_b2  (D,)
    compute_dtype: dtype of the matmul operands (accumulation is always f32);
      defaults to bfloat16 (MXU-native).  Pass jnp.float32 for bit-tight math.
    """
    B, N, D = x.shape
    H = token_w1.shape[0]

    if pad_lanes:
        Np, Dp, Hp = _round_up(N, 8), _round_up(D, 128), _round_up(H, 128)
    else:
        Np, Dp, Hp = N, D, H

    f32 = jnp.float32

    def pad2(a, r, c):
        return jnp.pad(a, ((0, r - a.shape[0]), (0, c - a.shape[1])))

    def pad1(a, k):
        return jnp.pad(a, (0, k - a.shape[0]))

    # Kernel weight layouts (zero-pad + cast once on the host):
    #   token path:   untransposed PyTorch weights (left-multiplied in-kernel)
    #   channel path: transposed weights (right-multiplied, K on leading axis)
    w1t = pad2(token_w1, Hp, Np).astype(compute_dtype)        # (Hp, Np)
    w2t = pad2(token_w2, Np, Hp).astype(compute_dtype)        # (Np, Hp)
    w1c = pad2(chan_w1, Hp, Dp).T.astype(compute_dtype)       # (Dp, Hp)
    w2c = pad2(chan_w2, Dp, Hp).T.astype(compute_dtype)       # (Hp, Dp)
    b1t = pad1(token_b1, Hp).astype(f32)[:, None]             # (Hp, 1)
    b2t = pad1(token_b2, Np).astype(f32)[:, None]             # (Np, 1)
    b1c = pad1(chan_b1, Hp).astype(f32)[None, :]              # (1, Hp)
    b2c = pad1(chan_b2, Dp).astype(f32)[None, :]              # (1, Dp)
    kparams = (w1t, b1t, w2t, b2t, w1c, b1c, w2c, b2c)

    xp = jnp.pad(x, ((0, 0), (0, Np - N), (0, Dp - D)))
    x2d = xp.reshape(B * Np, Dp)

    cap = _vmem_capacity_bytes()
    x_isz = jnp.dtype(x.dtype).itemsize
    c_isz = jnp.dtype(compute_dtype).itemsize
    if block_b is None:
        block_b = _choose_block_b(B, Np, Dp, Hp, x_isz, c_isz, cap)
        if (block_b * Np) % 8 != 0 and block_b != B:
            block_b = B   # unpadded, unaligned rows: use the full-array block
    assert B % block_b == 0, "block_b must divide the batch size"

    need = _block_footprint_bytes(block_b, Np, Dp, Hp, x_isz, c_isz)
    vmem_limit = int(min(max(2 * need, 32 << 20), int(cap * 0.9)))

    out2d = _run_mixer(x2d, kparams, batch=B, block_b=block_b,
                       num_tokens=Np, dim_p=Dp,
                       compute_dtype=compute_dtype,
                       approximate_gelu=approximate_gelu,
                       vmem_limit=vmem_limit)
    out = out2d.reshape(B, Np, Dp)
    if Np != N or Dp != D:
        out = out[:, :N, :D]
    return out


def _reference(x, token_w1, token_b1, token_w2, token_b2,
               chan_w1, chan_b1, chan_w2, chan_b2):
    """Pure-JAX f32 reference mirroring the PyTorch forward exactly."""
    xf = x.astype(jnp.float32)
    xp = jnp.transpose(xf, (0, 2, 1))                                  # (B, D, N)
    h = _gelu(xp @ token_w1.T.astype(jnp.float32) + token_b1, False)   # (B, D, H)
    t = h @ token_w2.T.astype(jnp.float32) + token_b2                  # (B, D, N)
    x1 = xf + jnp.transpose(t, (0, 2, 1))                              # (B, N, D)
    h2 = _gelu(x1 @ chan_w1.T.astype(jnp.float32) + chan_b1, False)    # (B, N, H)
    c = h2 @ chan_w2.T.astype(jnp.float32) + chan_b2                   # (B, N, D)
    return (x1 + c).astype(x.dtype)


if __name__ == "__main__":
    # Small shapes consistent with the module: batch=2, num_tokens=8, dim=16,
    # hidden_dim=32.  (The wrapper pads D/H to 128 and N to 8 for lane-dense
    # stores; padding is exact and sliced off.)
    B, N, D, H = 2, 8, 16, 32

    key = jax.random.PRNGKey(0)
    ks = jax.random.split(key, 9)
    x = jax.random.normal(ks[0], (B, N, D), dtype=jnp.float32)

    # PyTorch Linear layouts: weight (out, in), bias (out,)
    token_w1 = jax.random.normal(ks[1], (H, N), dtype=jnp.float32) * 0.1
    token_b1 = jax.random.normal(ks[2], (H,), dtype=jnp.float32) * 0.1
    token_w2 = jax.random.normal(ks[3], (N, H), dtype=jnp.float32) * 0.1
    token_b2 = jax.random.normal(ks[4], (N,), dtype=jnp.float32) * 0.1
    chan_w1 = jax.random.normal(ks[5], (H, D), dtype=jnp.float32) * 0.1
    chan_b1 = jax.random.normal(ks[6], (H,), dtype=jnp.float32) * 0.1
    chan_w2 = jax.random.normal(ks[7], (D, H), dtype=jnp.float32) * 0.1
    chan_b2 = jax.random.normal(ks[8], (D,), dtype=jnp.float32) * 0.1

    params = (token_w1, token_b1, token_w2, token_b2,
              chan_w1, chan_b1, chan_w2, chan_b2)

    ref = _reference(x, *params)

    # f32 matmul operands: must closely match the f32 reference.
    out = jax.block_until_ready(
        mlp_mixer_layer(x, *params, compute_dtype=jnp.float32))
    assert out.shape == (B, N, D)
    assert jnp.allclose(out, ref, atol=1e-4, rtol=1e-4), "f32 mismatch vs reference"

    # Default path: bf16 matmul operands with f32 accumulation (MXU-peak).
    out_bf16 = jax.block_until_ready(mlp_mixer_layer(x, *params))
    assert out_bf16.shape == (B, N, D)
    assert jnp.allclose(out_bf16, ref, atol=5e-2, rtol=5e-2), "bf16 mismatch vs reference"

    print("KERNEL_OK")
</pallas_src>

<mosaic_0001>
module attributes {stable_mosaic.version = 11 : i64} {
  func.func @_mixer_kernel(%arg0: i32, %arg1: memref<8x128xf32, #tpu.memory_space<vmem>>, %arg2: memref<128x8xf32, #tpu.memory_space<vmem>>, %arg3: memref<128x1xf32, #tpu.memory_space<vmem>>, %arg4: memref<8x128xf32, #tpu.memory_space<vmem>>, %arg5: memref<8x1xf32, #tpu.memory_space<vmem>>, %arg6: memref<128x128xf32, #tpu.memory_space<vmem>>, %arg7: memref<1x128xf32, #tpu.memory_space<vmem>>, %arg8: memref<128x128xf32, #tpu.memory_space<vmem>>, %arg9: memref<1x128xf32, #tpu.memory_space<vmem>>, %arg10: memref<8x128xf32, #tpu.memory_space<vmem>>, %arg11: memref<8x128xf32, #tpu.memory_space<vmem>>) attributes {dimension_semantics = [#tpu.dimension_semantics<parallel>], iteration_bounds = array<i64: 2>, scalar_prefetch = 0 : i64, scratch_operands = 1 : i64, tpu.core_type = #tpu.core_type<tc>, window_params = [{transform_indices = @transform_0, window_bounds = array<i64: 8, 128>}, {pipeline_mode = #tpu.pipeline_mode<synchronous>, transform_indices = @transform_1, window_bounds = array<i64: 128, 8>}, {pipeline_mode = #tpu.pipeline_mode<synchronous>, transform_indices = @transform_2, window_bounds = array<i64: 128, 1>}, {pipeline_mode = #tpu.pipeline_mode<synchronous>, transform_indices = @transform_3, window_bounds = array<i64: 8, 128>}, {pipeline_mode = #tpu.pipeline_mode<synchronous>, transform_indices = @transform_4, window_bounds = array<i64: 8, 1>}, {pipeline_mode = #tpu.pipeline_mode<synchronous>, transform_indices = @transform_5, window_bounds = array<i64: 128, 128>}, {pipeline_mode = #tpu.pipeline_mode<synchronous>, transform_indices = @transform_6, window_bounds = array<i64: 1, 128>}, {pipeline_mode = #tpu.pipeline_mode<synchronous>, transform_indices = @transform_7, window_bounds = array<i64: 128, 128>}, {pipeline_mode = #tpu.pipeline_mode<synchronous>, transform_indices = @transform_8, window_bounds = array<i64: 1, 128>}, {transform_indices = @transform_9, window_bounds = array<i64: 8, 128>}]} {
    %c0 = arith.constant 0 : index
    %c0_0 = arith.constant 0 : index
    %0 = vector.load %arg2[%c0, %c0_0] : memref<128x8xf32, #tpu.memory_space<vmem>>, vector<128x8xf32>
    %c0_1 = arith.constant 0 : index
    %c0_2 = arith.constant 0 : index
    %1 = vector.load %arg3[%c0_1, %c0_2] : memref<128x1xf32, #tpu.memory_space<vmem>>, vector<128x1xf32>
    %c0_3 = arith.constant 0 : index
    %c0_4 = arith.constant 0 : index
    %2 = vector.load %arg4[%c0_3, %c0_4] : memref<8x128xf32, #tpu.memory_space<vmem>>, vector<8x128xf32>
    %c0_5 = arith.constant 0 : index
    %c0_6 = arith.constant 0 : index
    %3 = vector.load %arg5[%c0_5, %c0_6] : memref<8x1xf32, #tpu.memory_space<vmem>>, vector<8x1xf32>
    %c0_7 = arith.constant 0 : index
    %c0_8 = arith.constant 0 : index
    %4 = vector.load %arg1[%c0_7, %c0_8] : memref<8x128xf32, #tpu.memory_space<vmem>>, vector<8x128xf32>
    %cst = arith.constant dense<0.000000e+00> : vector<128x128xf32>
    %5 = tpu.matmul %0, %4, %cst {dimension_numbers = #tpu.dot_dimension_numbers<[1], [0], [0], [1], [0, 0, 1, 1], [], []>} : vector<128x8xf32>, vector<8x128xf32>, vector<128x128xf32> -> vector<128x128xf32>
    %6 = vector.broadcast %1 : vector<128x1xf32> to vector<128x128xf32>
    %7 = arith.addf %5, %6 : vector<128x128xf32>
    %cst_9 = arith.constant 5.000000e-01 : f32
    %8 = vector.broadcast %cst_9 : f32 to vector<128x128xf32>
    %9 = arith.mulf %8, %7 : vector<128x128xf32>
    %cst_10 = arith.constant 0.707106769 : f32
    %10 = vector.broadcast %cst_10 : f32 to vector<128x128xf32>
    %11 = arith.mulf %7, %10 : vector<128x128xf32>
    %12 = math.erf %11 : vector<128x128xf32>
    %cst_11 = arith.constant 1.000000e+00 : f32
    %13 = vector.broadcast %cst_11 : f32 to vector<128x128xf32>
    %14 = arith.addf %13, %12 : vector<128x128xf32>
    %15 = arith.mulf %9, %14 : vector<128x128xf32>
    %cst_12 = arith.constant dense<0.000000e+00> : vector<8x128xf32>
    %16 = tpu.matmul %2, %15, %cst_12 {dimension_numbers = #tpu.dot_dimension_numbers<[1], [0], [0], [1], [0, 0, 1, 1], [], []>} : vector<8x128xf32>, vector<128x128xf32>, vector<8x128xf32> -> vector<8x128xf32>
    %17 = vector.broadcast %3 : vector<8x1xf32> to vector<8x128xf32>
    %18 = arith.addf %16, %17 : vector<8x128xf32>
    %19 = arith.addf %4, %18 : vector<8x128xf32>
    %c0_13 = arith.constant 0 : index
    %c0_14 = arith.constant 0 : index
    %20 = vector.load %arg11[%c0_13, %c0_14] : memref<8x128xf32, #tpu.memory_space<vmem>>, vector<8x128xf32>
    tpu.vector_store %arg11[%c0_13, %c0_14], %19 {strides = array<i32>} : memref<8x128xf32, #tpu.memory_space<vmem>>, vector<8x128xf32>,
    %c0_15 = arith.constant 0 : index
    %c0_16 = arith.constant 0 : index
    %21 = vector.load %arg11[%c0_15, %c0_16] : memref<8x128xf32, #tpu.memory_space<vmem>>, vector<8x128xf32>
    %c0_17 = arith.constant 0 : index
    %c0_18 = arith.constant 0 : index
    %22 = vector.load %arg6[%c0_17, %c0_18] : memref<128x128xf32, #tpu.memory_space<vmem>>, vector<128x128xf32>
    %cst_19 = arith.constant dense<0.000000e+00> : vector<8x128xf32>
    %23 = tpu.matmul %21, %22, %cst_19 {dimension_numbers = #tpu.dot_dimension_numbers<[1], [0], [0], [1], [0, 0, 1, 1], [], []>} : vector<8x128xf32>, vector<128x128xf32>, vector<8x128xf32> -> vector<8x128xf32>
    %c0_20 = arith.constant 0 : index
    %c0_21 = arith.constant 0 : index
    %24 = vector.load %arg7[%c0_20, %c0_21] : memref<1x128xf32, #tpu.memory_space<vmem>>, vector<1x128xf32>
    %25 = vector.broadcast %24 : vector<1x128xf32> to vector<8x128xf32>
    %26 = arith.addf %23, %25 : vector<8x128xf32>
    %cst_22 = arith.constant 5.000000e-01 : f32
    %27 = vector.broadcast %cst_22 : f32 to vector<8x128xf32>
    %28 = arith.mulf %27, %26 : vector<8x128xf32>
    %cst_23 = arith.constant 0.707106769 : f32
    %29 = vector.broadcast %cst_23 : f32 to vector<8x128xf32>
    %30 = arith.mulf %26, %29 : vector<8x128xf32>
    %31 = math.erf %30 : vector<8x128xf32>
    %cst_24 = arith.constant 1.000000e+00 : f32
    %32 = vector.broadcast %cst_24 : f32 to vector<8x128xf32>
    %33 = arith.addf %32, %31 : vector<8x128xf32>
    %34 = arith.mulf %28, %33 : vector<8x128xf32>
    %c0_25 = arith.constant 0 : index
    %c0_26 = arith.constant 0 : index
    %35 = vector.load %arg8[%c0_25, %c0_26] : memref<128x128xf32, #tpu.memory_space<vmem>>, vector<128x128xf32>
    %cst_27 = arith.constant dense<0.000000e+00> : vector<8x128xf32>
    %36 = tpu.matmul %34, %35, %cst_27 {dimension_numbers = #tpu.dot_dimension_numbers<[1], [0], [0], [1], [0, 0, 1, 1], [], []>} : vector<8x128xf32>, vector<128x128xf32>, vector<8x128xf32> -> vector<8x128xf32>
    %c0_28 = arith.constant 0 : index
    %c0_29 = arith.constant 0 : index
    %37 = vector.load %arg9[%c0_28, %c0_29] : memref<1x128xf32, #tpu.memory_space<vmem>>, vector<1x128xf32>
    %38 = vector.broadcast %37 : vector<1x128xf32> to vector<8x128xf32>
    %39 = arith.addf %36, %38 : vector<8x128xf32>
    %40 = arith.addf %21, %39 : vector<8x128xf32>
    %c0_30 = arith.constant 0 : index
    %c0_31 = arith.constant 0 : index
    %41 = vector.load %arg10[%c0_30, %c0_31] : memref<8x128xf32, #tpu.memory_space<vmem>>, vector<8x128xf32>
    tpu.vector_store %arg10[%c0_30, %c0_31], %40 {strides = array<i32>} : memref<8x128xf32, #tpu.memory_space<vmem>>, vector<8x128xf32>,
    return
  }
  func.func @transform_0(%arg0: i32) -> (i32, i32) {
    %c0_i32 = arith.constant 0 : i32
    %c0_i32_0 = arith.constant 0 : i32
    return %arg0, %c0_i32 : i32, i32
  }
  func.func @transform_1(%arg0: i32) -> (i32, i32) {
    %c0_i32 = arith.constant 0 : i32
    %c0_i32_0 = arith.constant 0 : i32
    %c0_i32_1 = arith.constant 0 : i32
    return %c0_i32, %c0_i32_0 : i32, i32
  }
  func.func @transform_2(%arg0: i32) -> (i32, i32) {
    %c0_i32 = arith.constant 0 : i32
    %c0_i32_0 = arith.constant 0 : i32
    %c0_i32_1 = arith.constant 0 : i32
    return %c0_i32, %c0_i32_0 : i32, i32
  }
  func.func @transform_3(%arg0: i32) -> (i32, i32) {
    %c0_i32 = arith.constant 0 : i32
    %c0_i32_0 = arith.constant 0 : i32
    %c0_i32_1 = arith.constant 0 : i32
    return %c0_i32, %c0_i32_0 : i32, i32
  }
  func.func @transform_4(%arg0: i32) -> (i32, i32) {
    %c0_i32 = arith.constant 0 : i32
    %c0_i32_0 = arith.constant 0 : i32
    %c0_i32_1 = arith.constant 0 : i32
    return %c0_i32, %c0_i32_0 : i32, i32
  }
  func.func @transform_5(%arg0: i32) -> (i32, i32) {
    %c0_i32 = arith.constant 0 : i32
    %c0_i32_0 = arith.constant 0 : i32
    %c0_i32_1 = arith.constant 0 : i32
    return %c0_i32, %c0_i32_0 : i32, i32
  }
  func.func @transform_6(%arg0: i32) -> (i32, i32) {
    %c0_i32 = arith.constant 0 : i32
    %c0_i32_0 = arith.constant 0 : i32
    %c0_i32_1 = arith.constant 0 : i32
    return %c0_i32, %c0_i32_0 : i32, i32
  }
  func.func @transform_7(%arg0: i32) -> (i32, i32) {
    %c0_i32 = arith.constant 0 : i32
    %c0_i32_0 = arith.constant 0 : i32
    %c0_i32_1 = arith.constant 0 : i32
    return %c0_i32, %c0_i32_0 : i32, i32
  }
  func.func @transform_8(%arg0: i32) -> (i32, i32) {
    %c0_i32 = arith.constant 0 : i32
    %c0_i32_0 = arith.constant 0 : i32
    %c0_i32_1 = arith.constant 0 : i32
    return %c0_i32, %c0_i32_0 : i32, i32
  }
  func.func @transform_9(%arg0: i32) -> (i32, i32) {
    %c0_i32 = arith.constant 0 : i32
    %c0_i32_0 = arith.constant 0 : i32
    return %arg0, %c0_i32 : i32, i32
  }
}

</mosaic_0001>

<bundles_post_ra>
// kernel: tpu_custom_call.1
= control target key start
LH: loop header
LB: loop body
LE: loop exit
PB: predicated region body
PF: predicated region fallthrough
CT: control target
= control target key end

     0   :  { %14 = vsyncpa [#allocation4], 0  ;;  %s2819_s0 = inlined_call_operand.hbm [shape: f32[16,128], index: 0, kind: input, shape index: {}]   ;;  %s2820_s1 = inlined_call_operand.vmem [shape: f32[128,8], index: 1, kind: input, shape index: {}]   ;;  %s2821_s2 = inlined_call_operand.vmem [shape: f32[128,1], index: 2, kind: input, shape index: {}]   ;;  %s2822_s3 = inlined_call_operand.vmem [shape: f32[8,128], index: 3, kind: input, shape index: {}]   ;;  %s2823_s4 = inlined_call_operand.vmem [shape: f32[8,1], index: 4, kind: input, shape index: {}]   ;;  %s2824_s5 = inlined_call_operand.vmem [shape: f32[128,128], index: 5, kind: input, shape index: {}]   ;;  %s2825_s6 = inlined_call_operand.vmem [shape: f32[1,128], index: 6, kind: input, shape index: {}]   ;;  %s2826_s7 = inlined_call_operand.vmem [shape: f32[128,128], index: 7, kind: input, shape index: {}]   ;;  %s2827_s8 = inlined_call_operand.vmem [shape: f32[1,128], index: 8, kind: input, shape index: {}]   ;;  %s2828_s9 = inlined_call_operand.hbm [shape: f32[16,128], index: 9, kind: output, shape index: {}]  }
   0x1   :  { %16 = vsyncpa [#allocation4 + $0x1], 0 }
   0x2   :  { %17 = vsyncpa [#allocation5], 0 }
   0x3   :  { %19 = vsyncpa [#allocation5 + $0x1], 0  ;;  %s1806_s30 = smov 0   ;;  %s1808_s10 = smov 0  }
   0x4   :  { %s1810_s11 = smov 0   ;;  %s1812_s12 = smov 0  }
   0x5 LB: > { %2843 = sst [smem:[#allocation9_spill]] %s1749_s11  ;;  %s1827_s13 = sadd.s32 4294967295, %s1753_s12   ;;  %s1753_s12 = sphi %s1812_s12, %s2902_s12   ;;  %s1749_s11 = sphi %s1810_s11, %s2904_s11   ;;  %s1745_s10 = sphi %s1808_s10, %s2906_s10   ;;  %s1741_s30 = sphi %s1806_s30, %s2905_s30  }
   0x6   : > { %s1523_s14 = sadd.s32 4294967294, %s1753_s12   ;;  %s1831_s15 = sadd.s32 1, %s1753_s12  }
   0x7   : > { %2844 = sst [smem:[#allocation10_spill]] %s1831_s15  ;;  %s32_s16 = sadd.s32 1, %s1749_s11 }
   0x8   : > { %s29_s17 = ssub.s32 %s1753_s12, %s1831_s15  ;;  %p39_p0 = scmp.ne.s32.totalorder %s1749_s11, %s1745_s10 }
   0x9   : > { %p30_p1 = scmp.eq.s32.totalorder %s29_s17, 0  ;;  %p40_p2 = scmp.eq.s32.totalorder %s1753_s12, 0 }
   0xa   : > { %p45_p3 = scmp.ne.s32.totalorder %s1745_s10, %s1741_s30  ;;  %p46_p4 = scmp.eq.s32.totalorder %s1827_s13, 0 }
   0xb   : > { %s1843_s18 = scalar_select %p30_p1, %s1749_s11, %s32_s16  }
   0xc   : > { %p1845_p5 = por %p40_p2, %p39_p0  ;;  %p1849_p6 = por %p46_p4, %p45_p3 }
   0xd   : > { %2845 = sst [smem:[#allocation11_spill]] %s1843_s18  ;;  %p237_p7 = scmp.eq.s32.totalorder %s1827_s13, 1 }
   0xe   : > { %p243_p8 = scmp.eq.s32.totalorder %s1523_s14, 1  ;;  %p1582_p10 = scmp.lt.s32.totalorder %s1753_s12, 2 }
   0xf   : > { %p1856_p11 = por %p237_p7, %p39_p0  ;;  %s287_s23 = sand.u32 1, %s1749_s11  }
  0x10   : > { %p1860_p12 = por %p243_p8, %p45_p3  ;;  %s1527_s24 = sshll.u32 %s1753_s12, 3 }
  0x11   : > { %s1526_s25 = sshll.u32 %s287_s23, 3  ;;  %s295_s28 = scalar_lea.hbm %s2819_s0, %s1527_s24 }
  0x12   : > { %s297_s29 = sshll.u32 %s295_s28, 4  ;;  %s291_s14 = scalar_lea.vmem [#allocation3], %s1526_s25  ;;  %s298_s29 = int_to_ptr.hbm [resolvable:$true] %s297_s29 }
  0x13   : > { %s299_s16 = sshll.u32 %s291_s14, 4  ;;  %p1871_p13 = pnand %p1582_p10, %p1845_p5  ;;  %s300_s16 = int_to_ptr.vmem [resolvable:$true] %s299_s16 }
  0x14   : > { %p1528_p0 = scmp.ge.s32.totalorder %s1753_s12, 1  ;;  %p304_p1 = scmp.lt.s32.totalorder %s1753_s12, 3 }
  0x15   : > { %s288_s18 = scalar_lea.sflag [#allocation4], %s287_s23  ;;  %s1657_s11 = sshra.s32 %s298_s29, 4  ;;  %s1658_s11 = int_to_ptr.hbm [resolvable:$true] %s1657_s11 }
  0x16   : > { %s1659_s15 = scalar_lea.hbm %s1658_s11, 8  ;;  %p1661_p3 = pneg %p1871_p13 }
  0x17   : > { %p1660_p2 = scmp.ne.s32.totalorder %s1658_s11, %s1659_s15  ;;  %s1664_s19 = scalar_lea.hbm %s2819_s0, 16 }
  0x18   : > { %p1665_p5 = scmp.lt.s32.totalorder %s1658_s11, %s2819_s0  ;;  %p1666_p8 = scmp.lt.s32.totalorder %s1664_s19, %s1659_s15 }
  0x19   : > { %p1662_p4 = pnand %p1661_p3, %p1660_p2 }
  0x1a   : > { %p1667_p10 = por %p1666_p8, %p1665_p5 }
  0x1b   : > { %p1663_p7 = pneg %p1662_p4 }
  0x1d   : > { %p1668_p9 = pnand %p1667_p10, %p1663_p7 }
  0x1f   : > { %1671 = shalt.err (!%p1668_p9)
}
  0x20   : > { %1577 = dma.hbm_to_vmem [thread:$0]  (!%p1871_p13), %s298_s29, 128, %s300_s16, %s288_s18  }
  0x21   : > { %p305_p2 = pnand %p1528_p0, %p304_p1 }
  0x23   : > { %308 = sbr.rel (%p305_p2) target bundleno = 830 (0x33e), region = 56 }
  0x28   : > { %s1892_s23 = sand.u32 1, %s1745_s10  }
  0x29   : > { %s1529_s11 = sshll.u32 %s1892_s23, 3  ;;  %s311_s15 = scalar_lea.sflag [#allocation4], %s1892_s23 }
  0x2a   : > { %s1898_s28 = scalar_lea.vmem [#allocation3], %s1529_s11 }
  0x2b   : > { %1732 = dma.done.wait (%p1849_p6), %s311_s15, 128  }
  0x2c   : > { %1734 = vsyncadd (%p1849_p6), %s311_s15, 4294967168  ;;  %v1755_v0 = vmov 0   ;;  %v384_v1 = vld [vmem:[%s1898_s28] sm:$0xff]  ;;  %v381_v2 = vld [vmem:[%s2821_s2 + $0x78] sm:$0xff]  ;;  %vm465_vm0 = vcmask 64512   ;;  %s349_s20 = scalar_lea.vmem [#allocation6], %s1529_s11 }
  0x2d   : > { %1618 = vset.pattern.permute.xlu1 %v1755_v0  ;;  %1617 = vset.pattern.permute.xlu0 %v1755_v0  ;;  %v379_v3 = vld [vmem:[%s2821_s2 + $0x68] sm:$0xff]  ;;  %v350_v4 = vld [vmem:[%s2820_s1] sm:$0xff]  ;;  %v357_v5 = vld [vmem:[%s2820_s1 + $0x38] sm:$0xff]  ;;  %s1450_s24 = sshll.u32 %s349_s20, 4  ;;  %s1707_s11 = scalar_lea.hbm %s2828_s9, 16  ;;  %s1451_s24 = int_to_ptr.vmem [resolvable:$true] %s1450_s24 }
  0x2e   : > { %1619 = vset.pattern.permute.xlu2 %v1755_v0  ;;  %529 = vmatpush.msra.mxu0 %v384_v1  ;;  %v361_v6 = vld [vmem:[%s2820_s1 + $0x58] sm:$0xff]  ;;  %v380_v8 = vld [vmem:[%s2821_s2 + $0x70] sm:$0xff]  ;;  %v378_v9 = vld [vmem:[%s2821_s2 + $0x60] sm:$0xff] }
  0x2f   : > { %1568 = vmatpush.msra.mxu1 %v384_v1  ;;  %1569 = vmatpush.msra.mxu2 %v384_v1  ;;  %v377_v7 = vld [vmem:[%s2821_s2 + $0x58] sm:$0xff]  ;;  %v351_v10 = vld [vmem:[%s2820_s1 + $0x8] sm:$0xff]  ;;  %v358_v11 = vld [vmem:[%s2820_s1 + $0x40] sm:$0xff] }
  0x30   : > { %462 = vperm.xlu0 %1617, %v381_v2   ;;  %452 = vperm.xlu1 %1618, %v379_v3   ;;  %v362_v12 = vld [vmem:[%s2820_s1 + $0x60] sm:$0xff]  ;;  %v376_v13 = vld [vmem:[%s2821_s2 + $0x50] sm:$0xff]  ;;  %v375_v14 = vld [vmem:[%s2821_s2 + $0x48] sm:$0xff] }
  0x31   : > { %1531 = vmatmul.msk.f32.vlgmr.msra.gmra.mxu0 %vm465_vm0, %v350_v4  ;;  %1538 = vmatmul.msk.f32.vlgmr.msra.gmra.mxu1 %vm465_vm0, %v357_v5  ;;  %v374_v15 = vld [vmem:[%s2821_s2 + $0x40] sm:$0xff]  ;;  %v352_v16 = vld [vmem:[%s2820_s1 + $0x10] sm:$0xff]  ;;  %v359_v17 = vld [vmem:[%s2820_s1 + $0x48] sm:$0xff] }
  0x32   : > { %1542 = vmatmul.msk.f32.vlgmr.msra.gmra.mxu2 %vm465_vm0, %v361_v6  ;;  %442 = vperm.xlu2 %1619, %v377_v7   ;;  %v363_v18 = vld [vmem:[%s2820_s1 + $0x68] sm:$0xff]  ;;  %v373_v19 = vld [vmem:[%s2821_s2 + $0x38] sm:$0xff]  ;;  %v372_v20 = vld [vmem:[%s2821_s2 + $0x30] sm:$0xff] }
  0x33   : > { %v371_v21 = vld [vmem:[%s2821_s2 + $0x28] sm:$0xff]  ;;  %v353_v22 = vld [vmem:[%s2820_s1 + $0x18] sm:$0xff]  ;;  %v360_v23 = vld [vmem:[%s2820_s1 + $0x50] sm:$0xff] }
  0x34   : > { %v364_v24 = vld [vmem:[%s2820_s1 + $0x70] sm:$0xff]  ;;  %v370_v25 = vld [vmem:[%s2821_s2 + $0x20] sm:$0xff]  ;;  %v369_v26 = vld [vmem:[%s2821_s2 + $0x18] sm:$0xff] }
  0x35   : > { %v368_v27 = vld [vmem:[%s2821_s2 + $0x10] sm:$0xff]  ;;  %v354_v28 = vld [vmem:[%s2820_s1 + $0x20] sm:$0xff]  ;;  %v365_v29 = vld [vmem:[%s2820_s1 + $0x78] sm:$0xff] }
  0x36   : > { %v367_v30 = vld [vmem:[%s2821_s2 + $0x8] sm:$0xff]  ;;  %v366_v31 = vld [vmem:[%s2821_s2] sm:$0xff]  ;;  %v356_v34 = vld [vmem:[%s2820_s1 + $0x30] sm:$0xff] }
  0x37   : > { %v355_v32 = vld [vmem:[%s2820_s1 + $0x28] sm:$0xff]  ;;  %v383_v33 = vld [vmem:[%s2823_s4] sm:$0xff] }
  0x38   : > { %457 = vperm.xlu0 %1617, %v380_v8   ;;  %447 = vperm.xlu1 %1618, %v378_v9  }
  0x39   : > { %1532 = vmatmul.msk.f32.gmra.mxu0 %vm465_vm0, %v351_v10  ;;  %1539 = vmatmul.msk.f32.gmra.mxu1 %vm465_vm0, %v358_v11 }
  0x3a   : > { %1543 = vmatmul.msk.f32.gmra.mxu2 %vm465_vm0, %v362_v12  ;;  %437 = vperm.xlu2 %1619, %v376_v13  }
  0x40   : > { %432 = vperm.xlu0 %1617, %v375_v14   ;;  %427 = vperm.xlu1 %1618, %v374_v15  }
  0x41   : > { %1533 = vmatmul.msk.f32.gmra.mxu0 %vm465_vm0, %v352_v16  ;;  %1540 = vmatmul.msk.f32.gmra.mxu1 %vm465_vm0, %v359_v17 }
  0x42   : > { %1544 = vmatmul.msk.f32.gmra.mxu2 %vm465_vm0, %v363_v18  ;;  %422 = vperm.xlu2 %1619, %v373_v19  }
  0x48   : > { %417 = vperm.xlu0 %1617, %v372_v20   ;;  %412 = vperm.xlu1 %1618, %v371_v21  }
  0x49   : > { %1534 = vmatmul.msk.f32.gmra.mxu0 %vm465_vm0, %v353_v22  ;;  %1541 = vmatmul.msk.f32.gmra.mxu1 %vm465_vm0, %v360_v23 }
  0x4a   : > { %1545 = vmatmul.msk.f32.gmra.mxu2 %vm465_vm0, %v364_v24  ;;  %407 = vperm.xlu2 %1619, %v370_v25  }
  0x50   : > { %402 = vperm.xlu0 %1617, %v369_v26   ;;  %397 = vperm.xlu1 %1618, %v368_v27  }
  0x51   : > { %1535 = vmatmul.msk.f32.gmra.mxu0 %vm465_vm0, %v354_v28 }
  0x52   : > { %1546 = vmatmul.msk.f32.gmra.mxu2 %vm465_vm0, %v365_v29  ;;  %392 = vperm.xlu2 %1619, %v367_v30  }
  0x58   : > { %387 = vperm.xlu0 %1617, %v366_v31   ;;  %1285 = vperm.xlu1 %1618, %v383_v33  }
  0x59   : > { %1536 = vmatmul.msk.f32.gmra.mxu0 %vm465_vm0, %v355_v32 }
  0x61   : > { %1537 = vmatmul.msk.f32.gmra.mxu0 %vm465_vm0, %v356_v34 }
  0x8c   : > { %v443_v35 = vpop.permute.xlu2 %442 }
  0x94   : > { %v2020_v36 = vpop.permute.xlu2 %437 }
  0x9c   : > { %v423_v37 = vpop.permute.xlu2 %422 }
  0xa2   : > { %v453_v38 = vpop.permute.xlu1 %452  ;;  %v2022_v39 = vpop.permute.xlu0 %462 }
  0xa4   : > { %v2024_v40 = vpop.permute.xlu2 %407 }
  0xaa   : > { %v448_v41 = vpop.permute.xlu1 %447  ;;  %v2028_v43 = vpop.permute.xlu0 %457 }
  0xac   : > { %v393_v49 = vpop.permute.xlu2 %392 }
  0xae   : > { %v2026_v42 = vpop.f32.mrf.mxu0  ;;  %v552_v44 = vpop.f32.mrf.mxu1 }
  0xaf   : > { %v2030_v45 = vadd.f32 %v552_v44, %v423_v37 }
  0xb1   : > { %v2033_v46 = vmul.f32 0.70710677, %v2030_v45 }
  0xb2   : > { %v428_v47 = vpop.permute.xlu1 %427  ;;  %v433_v59 = vpop.permute.xlu0 %432 }
  0xb3   : > { %v891_v48 = vmul.f32 %v2033_v46, %v2033_v46 }
  0xb5   : > { %v564_v50 = vpop.f32.mrf.mxu2  ;;  %v2037_v51 = vmin.f32 %v891_v48, 16.0 }
  0xb6   : > { %v2039_v52 = vadd.f32 %v564_v50, %v443_v35  ;;  %v534_v53 = vpop.f32.mrf.mxu0  ;;  %v555_v55 = vpop.f32.mrf.mxu1 }
  0xb7   : > { %v2041_v54 = vadd.f32 %v534_v53, %v393_v49  ;;  %v893_v56 = vmul.f32 2.1237322e-06, %v2037_v51  ;;  %v2047_v58 = vadd.f32 %v555_v55, %v428_v47 }
  0xb8   : > { %v2045_v57 = vmul.f32 0.70710677, %v2039_v52 }
  0xb9   : > { %2851 = vst [vmem:[#allocation12_spill] sm:$0xff] %v2041_v54  ;;  %v2050_v60 = vmul.f32 0.70710677, %v2041_v54  ;;  %v894_v61 = vadd.f32 0.00028619796, %v893_v56 }
  0xba   : > { %v1051_v62 = vmul.f32 %v2045_v57, %v2045_v57  ;;  %v2055_v63 = vmul.f32 0.70710677, %v2047_v58  ;;  %v2057_v0 = vpop.permute.xlu1 %412  ;;  %v2080_v19 = vpop.permute.xlu0 %417 }
  0xbb   : > { %2852 = vst [vmem:[#allocation13_spill] sm:$0xff] %v2050_v60  ;;  %v651_v3 = vmul.f32 %v2050_v60, %v2050_v60  ;;  %v895_v5 = vmul.f32 %v894_v61, %v2037_v51 }
  0xbc   : > { %v2059_v1 = vmin.f32 %v1051_v62, 16.0  ;;  %v931_v2 = vmul.f32 %v2055_v63, %v2055_v63 }
  0xbd   : > { %v567_v4 = vpop.f32.mrf.mxu2  ;;  %v2072_v13 = vmin.f32 %v651_v3, 16.0  ;;  %v896_v16 = vadd.f32 0.0036580483, %v895_v5 }
  0xbe   : > { %v1053_v6 = vmul.f32 2.1237322e-06, %v2059_v1  ;;  %v2067_v7 = vmin.f32 %v931_v2, 16.0  ;;  %v2069_v8 = vadd.f32 %v567_v4, %v448_v41  ;;  %v537_v9 = vpop.f32.mrf.mxu0  ;;  %v558_v10 = vpop.f32.mrf.mxu1 }
  0xbf   : > { %v2077_v15 = vadd.f32 %v558_v10, %v433_v59  ;;  %v653_v24 = vmul.f32 2.1237322e-06, %v2072_v13  ;;  %v897_v28 = vmul.f32 %v896_v16, %v2037_v51 }
  0xc0   : > { %v1054_v11 = vadd.f32 0.00028619796, %v1053_v6  ;;  %v933_v12 = vmul.f32 2.1237322e-06, %v2067_v7  ;;  %v2075_v14 = vmul.f32 0.70710677, %v2069_v8 }
  0xc1   : > { %v2085_v21 = vmul.f32 0.70710677, %v2077_v15  ;;  %v654_v37 = vadd.f32 0.00028619796, %v653_v24  ;;  %v898_v48 = vadd.f32 0.05243302, %v897_v28 }
  0xc2   : > { %v1055_v17 = vmul.f32 %v1054_v11, %v2059_v1  ;;  %v934_v18 = vadd.f32 0.00028619796, %v933_v12  ;;  %v1091_v20 = vmul.f32 %v2075_v14, %v2075_v14  ;;  %v398_v22 = vpop.permute.xlu1 %397  ;;  %v403_v61 = vpop.permute.xlu0 %402 }
  0xc3   : > { %v2087_v23 = vadd.f32 %v537_v9, %v398_v22  ;;  %v971_v26 = vmul.f32 %v2085_v21, %v2085_v21  ;;  %v899_v4 = vmul.f32 %v898_v48, %v2037_v51 }
  0xc4   : > { %v2090_v25 = vmin.f32 %v1091_v20, 16.0  ;;  %v1056_v29 = vadd.f32 0.0036580483, %v1055_v17  ;;  %v935_v30 = vmul.f32 %v934_v18, %v2067_v7 }
  0xc5   : > { %2853 = vst [vmem:[#allocation14_spill] sm:$0xff] %v2087_v23  ;;  %v570_v27 = vpop.f32.mrf.mxu2  ;;  %v2097_v32 = vmin.f32 %v971_v26, 16.0  ;;  %v2100_v33 = vmul.f32 0.70710677, %v2087_v23  ;;  %v900_v24 = vadd.f32 0.18741608, %v899_v4 }
  0xc6   : > { %v1093_v31 = vmul.f32 2.1237322e-06, %v2090_v25  ;;  %v2102_v34 = vadd.f32 %v570_v27, %v453_v38  ;;  %v540_v35 = vpop.f32.mrf.mxu0  ;;  %v1057_v49 = vmul.f32 %v1056_v29, %v2059_v1  ;;  %v936_v50 = vadd.f32 0.0036580483, %v935_v30  ;;  %v561_v16 = vpop.f32.mrf.mxu1 }
  0xc7   : > { %2854 = vst [vmem:[#allocation15_spill] sm:$0xff] %v2100_v33  ;;  %v973_v44 = vmul.f32 2.1237322e-06, %v2097_v32  ;;  %v691_v47 = vmul.f32 %v2100_v33, %v2100_v33  ;;  %v655_v38 = vmul.f32 %v654_v37, %v2072_v13  ;;  %v2118_v3 = vadd.f32 %v540_v35, %v403_v61 }
  0xc8   : > { %v1094_v41 = vadd.f32 0.00028619796, %v1093_v31  ;;  %v2111_v56 = vmul.f32 0.70710677, %v2102_v34  ;;  %v1058_v5 = vadd.f32 0.05243302, %v1057_v49  ;;  %v937_v6 = vmul.f32 %v936_v50, %v2067_v7 }
  0xc9   : > { %v974_v53 = vadd.f32 0.00028619796, %v973_v44  ;;  %v2108_v55 = vmin.f32 %v691_v47, 16.0  ;;  %2855 = vst [vmem:[#allocation16_spill] sm:$0xff] %v2118_v3  ;;  %v656_v11 = vadd.f32 0.0036580483, %v655_v38  ;;  %v2133_v31 = vadd.f32 %v561_v16, %v2020_v36 }
  0xca   : > { %v1095_v59 = vmul.f32 %v1094_v41, %v2090_v25  ;;  %v1131_v2 = vmul.f32 %v2111_v56, %v2111_v56  ;;  %v2127_v20 = vmul.f32 0.70710677, %v2118_v3  ;;  %v1059_v26 = vmul.f32 %v1058_v5, %v2059_v1  ;;  %v388_v5 = vpop.permute.xlu0 %387 }
  0xcb   : > { %v975_v62 = vmul.f32 %v974_v53, %v2097_v32  ;;  %v693_v9 = vmul.f32 2.1237322e-06, %v2108_v55  ;;  %v938_v27 = vadd.f32 0.05243302, %v937_v6  ;;  %v657_v37 = vmul.f32 %v656_v11, %v2072_v13 }
  0xcc   : > { %v2123_v10 = vmin.f32 %v1131_v2, 16.0  ;;  %v1096_v12 = vadd.f32 0.0036580483, %v1095_v59  ;;  %2856 = vst [vmem:[#allocation17_spill] sm:$0xff] %v2127_v20  ;;  %v731_v30 = vmul.f32 %v2127_v20, %v2127_v20  ;;  %v2141_v48 = vmul.f32 0.70710677, %v2133_v31 }
  0xcd   : > { %v976_v17 = vadd.f32 0.0036580483, %v975_v62  ;;  %v694_v28 = vadd.f32 0.00028619796, %v693_v9  ;;  %v573_v35 = vpop.f32.mrf.mxu2  ;;  %v2144_v49 = vmul.f32 0.5, %v2030_v45  ;;  %v901_v50 = vmul.f32 %v900_v24, %v2037_v51 }
  0xce   : > { %v1133_v18 = vmul.f32 2.1237322e-06, %v2123_v10  ;;  %v543_v22 = vpop.f32.mrf.mxu0  ;;  %v1097_v41 = vmul.f32 %v1096_v12, %v2090_v25  ;;  %v2138_v47 = vmin.f32 %v731_v30, 16.0  ;;  %v1060_v53 = vadd.f32 0.18741608, %v1059_v26 }
  0xcf   : > { %v977_v44 = vmul.f32 %v976_v17, %v2097_v32  ;;  %v939_v36 = vmul.f32 %v938_v27, %v2067_v7  ;;  %v2149_v38 = vmul.f32 0.5, %v2039_v52  ;;  %v695_v59 = vmul.f32 %v694_v28, %v2108_v55 }
  0xd0   : > { %v1134_v29 = vadd.f32 0.00028619796, %v1133_v18  ;;  %v1011_v62 = vmul.f32 %v2141_v48, %v2141_v48  ;;  %v658_v2 = vadd.f32 0.05243302, %v657_v37  ;;  %v2156_v4 = vmul.f32 0.5, %v2047_v58 }
  0xd1   : > { %v1098_v45 = vadd.f32 0.05243302, %v1097_v41  ;;  %v2159_v6 = vadd.f32 %v573_v35, %v2028_v43  ;;  %v2162_v9 = vmul.f32 0.5, %v2069_v8  ;;  %v978_v52 = vadd.f32 0.05243302, %v977_v44 }
  0xd2   : > { %v1135_v61 = vmul.f32 %v1134_v29, %v2123_v10  ;;  %v733_v11 = vmul.f32 2.1237322e-06, %v2138_v47  ;;  %v2165_v12 = vmin.f32 %v1011_v62, 16.0  ;;  %v902_v16 = vadd.f32 1.1283791, %v901_v50 }
  0xd3   : > { %v1061_v17 = vmul.f32 %v1060_v53, %v2059_v1  ;;  %v940_v18 = vadd.f32 0.18741608, %v939_v36  ;;  %v2169_v58 = vmul.f32 0.5, %v2077_v15  ;;  %v696_v24 = vadd.f32 0.0036580483, %v695_v59 }
  0xd4   : > { %v1136_v26 = vadd.f32 0.0036580483, %v1135_v61  ;;  %v1013_v43 = vmul.f32 2.1237322e-06, %v2165_v12  ;;  %v2173_v27 = vadd.f32 %v2026_v42, %v388_v5  ;;  %v2176_v28 = vmul.f32 %v658_v2, %v2072_v13 }
  0xd5   : > { %v2179_v29 = vmul.f32 0.5, %v2102_v34  ;;  %v2182_v30 = vmul.f32 0.70710677, %v2159_v6  ;;  %v2185_v15 = vadd.f32 %v543_v22, %v2024_v40  ;;  %v1099_v35 = vmul.f32 %v1098_v45, %v2090_v25  ;;  %v576_v44 = vpop.f32.mrf.mxu2 }
  0xd6   : > { %2857 = vst [vmem:[#allocation18_spill] sm:$0xff] %v2173_v27  ;;  %v546_v8 = vpop.f32.mrf.mxu0  ;;  %v979_v37 = vmul.f32 %v978_v52, %v2097_v32  ;;  %v734_v41 = vadd.f32 0.00028619796, %v733_v11  ;;  %v1014_v42 = vadd.f32 0.00028619796, %v1013_v43  ;;  %v941_v53 = vmul.f32 %v940_v18, %v2067_v7 }
  0xd7   : > { %2858 = vst [vmem:[#allocation19_spill] sm:$0xff] %v2176_v28  ;;  %v1062_v50 = vadd.f32 1.1283791, %v1061_v17  ;;  %v1171_v34 = vmul.f32 %v2182_v30, %v2182_v30  ;;  %v2193_v36 = vmul.f32 0.70710677, %v2185_v15  ;;  %v697_v59 = vmul.f32 %v696_v24, %v2108_v55 }
  0xd8   : > { %2859 = vst [vmem:[#allocation20_spill] sm:$0xff] %v2185_v15  ;;  %v1137_v40 = vmul.f32 %v1136_v26, %v2123_v10  ;;  %v1015_v22 = vmul.f32 %v1014_v42, %v2165_v12  ;;  %v2199_v61 = vmul.f32 0.70710677, %v2173_v27  ;;  %v2202_v62 = vmul.f32 %v902_v16, %v2033_v46 }
  0xd9   : > { %v2204_v2 = vmin.f32 %v1171_v34, 16.0  ;;  %v771_v45 = vmul.f32 %v2193_v36, %v2193_v36  ;;  %v2209_v5 = vadd.f32 %v576_v44, %v2022_v39  ;;  %v1100_v52 = vadd.f32 0.18741608, %v1099_v35 }
  0xda   : > { %2860 = vst [vmem:[#allocation21_spill] sm:$0xff] %v2199_v61  ;;  %v980_v11 = vadd.f32 0.18741608, %v979_v37  ;;  %v735_v17 = vmul.f32 %v734_v41, %v2138_v47  ;;  %v1016_v18 = vadd.f32 0.0036580483, %v1015_v22  ;;  %v2213_v24 = vmul.f32 %v1062_v50, %v2045_v57 }
  0xdb   : > { %v1173_v26 = vmul.f32 2.1237322e-06, %v2204_v2  ;;  %v2216_v46 = vmin.f32 %v771_v45, 16.0  ;;  %v2219_v16 = vmul.f32 0.70710677, %v2209_v5  ;;  %v611_v39 = vmul.f32 %v2199_v61, %v2199_v61 }
  0xdc   : > { %v942_v43 = vadd.f32 1.1283791, %v941_v53  ;;  %v698_v42 = vadd.f32 0.05243302, %v697_v59  ;;  %v1138_v34 = vadd.f32 0.05243302, %v1137_v40  ;;  %v2227_v41 = vadd.f32 %v546_v8, %v2057_v0 }
  0xdd   : > { %v1174_v35 = vadd.f32 0.00028619796, %v1173_v26  ;;  %v773_v37 = vmul.f32 2.1237322e-06, %v2216_v46  ;;  %v1211_v57 = vmul.f32 %v2219_v16, %v2219_v16  ;;  %v1101_v44 = vmul.f32 %v1100_v52, %v2090_v25 }
  0xde   : > { %2861 = vst [vmem:[#allocation22_spill] sm:$0xff] %v2227_v41  ;;  %v981_v50 = vmul.f32 %v980_v11, %v2097_v32  ;;  %v736_v22 = vadd.f32 0.0036580483, %v735_v17  ;;  %v2232_v53 = vmul.f32 0.5, %v2133_v31  ;;  %v549_v59 = vpop.f32.mrf.mxu0  ;;  %v1017_v40 = vmul.f32 %v1016_v18, %v2165_v12 }
  0xdf   : > { %v1175_v45 = vmul.f32 %v1174_v35, %v2204_v2  ;;  %v774_v26 = vadd.f32 0.00028619796, %v773_v37  ;;  %v2236_v27 = vmin.f32 %v1211_v57, 16.0  ;;  %v699_v61 = vmul.f32 %v698_v42, %v2108_v55 }
  0xe0   : > { %v1139_v0 = vmul.f32 %v1138_v34, %v2123_v10  ;;  %v2240_v8 = vmin.f32 %v611_v39, 16.0  ;;  %v2243_v52 = vmul.f32 0.70710677, %v2227_v41  ;;  %v2248_v18 = vadd.f32 %v549_v59, %v2080_v19 }
  0xe1   : > { %v1176_v11 = vadd.f32 0.0036580483, %v1175_v45  ;;  %v775_v31 = vmul.f32 %v774_v26, %v2216_v46  ;;  %v1213_v17 = vmul.f32 2.1237322e-06, %v2236_v27  ;;  %v1102_v35 = vadd.f32 1.1283791, %v1101_v44 }
  0xe2   : > { %2862 = vst [vmem:[#allocation23_spill] sm:$0xff] %v2248_v18  ;;  %v982_v37 = vadd.f32 1.1283791, %v981_v50  ;;  %v737_v57 = vmul.f32 %v736_v22, %v2138_v47  ;;  %v811_v42 = vmul.f32 %v2243_v52, %v2243_v52  ;;  %v1018_v34 = vadd.f32 0.05243302, %v1017_v40 }
  0xe3   : > { %v1177_v39 = vmul.f32 %v1176_v11, %v2204_v2  ;;  %v776_v54 = vadd.f32 0.0036580483, %v775_v31  ;;  %v1214_v60 = vadd.f32 0.00028619796, %v1213_v17  ;;  %v2254_v45 = vadd.f32 0.18741608, %v699_v61 }
  0xe4   : > { %v613_v26 = vmul.f32 2.1237322e-06, %v2240_v8  ;;  %v2258_v23 = vmul.f32 0.5, %v2159_v6  ;;  %v2260_v19 = vmin.f32 %v811_v42, 16.0  ;;  %v1140_v44 = vadd.f32 0.18741608, %v1139_v0 }
  0xe5   : > { %2863 = vst [vmem:[#allocation24_spill] sm:$0xff] %v2254_v45  ;;  %v777_v50 = vmul.f32 %v776_v54, %v2216_v46  ;;  %v1215_v22 = vmul.f32 %v1214_v60, %v2236_v27  ;;  %v2265_v59 = vmul.f32 0.70710677, %v2248_v18  ;;  %v2268_v40 = vmul.f32 %v942_v43, %v2055_v63 }
  0xe6   : > { %v738_v61 = vadd.f32 0.05243302, %v737_v57  ;;  %v813_v11 = vmul.f32 2.1237322e-06, %v2260_v19  ;;  %v1224_v31 = vmul.f32 3.8918573e-05, %v2236_v27  ;;  %v1019_v6 = vmul.f32 %v1018_v34, %v2165_v12 }
  0xe7   : > { %v1178_v17 = vadd.f32 0.05243302, %v1177_v39  ;;  %v1216_v42 = vadd.f32 0.0036580483, %v1215_v22  ;;  %v851_v54 = vmul.f32 %v2265_v59, %v2265_v59  ;;  %v2276_v60 = vmul.f32 %v1102_v35, %v2075_v14 }
  0xe8   : > { %v614_v0 = vadd.f32 0.00028619796, %v613_v26  ;;  %v814_v33 = vadd.f32 0.00028619796, %v813_v11  ;;  %v1225_v3 = vadd.f32 0.001143296, %v1224_v31  ;;  %v1141_v63 = vmul.f32 %v1140_v44, %v2123_v10 }
  0xe9   : > { %v778_v43 = vadd.f32 0.05243302, %v777_v50  ;;  %v1217_v57 = vmul.f32 %v1216_v42, %v2236_v27  ;;  %v2280_v28 = vmin.f32 %v851_v54, 16.0  ;;  %v739_v34 = vmul.f32 %v738_v61, %v2138_v47 }
  0xea   : > { %v815_v39 = vmul.f32 %v814_v33, %v2260_v19  ;;  %v1226_v22 = vmul.f32 %v1225_v3, %v2236_v27  ;;  %v1184_v15 = vmul.f32 3.8918573e-05, %v2204_v2  ;;  %v1020_v14 = vadd.f32 0.18741608, %v1019_v6 }
  0xeb   : > { %v1179_v35 = vmul.f32 %v1178_v17, %v2204_v2  ;;  %v1218_v26 = vadd.f32 0.05243302, %v1217_v57  ;;  %v853_v11 = vmul.f32 2.1237322e-06, %v2280_v28  ;;  %v2289_v44 = vmul.f32 %v982_v37, %v2085_v21 }
  0xec   : > { %v816_v50 = vadd.f32 0.0036580483, %v815_v39  ;;  %v1227_v31 = vadd.f32 0.014752088, %v1226_v22  ;;  %v1185_v42 = vadd.f32 0.001143296, %v1184_v15  ;;  %v779_v61 = vmul.f32 %v778_v43, %v2216_v46 }
  0xed   : > { %v2293_v33 = vmul.f32 0.5, %v2209_v5  ;;  %v1219_v3 = vmul.f32 %v1218_v26, %v2236_v27  ;;  %v854_v54 = vadd.f32 0.00028619796, %v853_v11  ;;  %v1144_v21 = vmul.f32 3.8918573e-05, %v2123_v10 }
  0xee   : > { %v817_v6 = vmul.f32 %v816_v50, %v2260_v19  ;;  %v1228_v17 = vmul.f32 %v1227_v31, %v2236_v27  ;;  %v1186_v57 = vmul.f32 %v1185_v42, %v2204_v2  ;;  %v1142_v37 = vadd.f32 1.1283791, %v1141_v63 }
  0xef   : > { %v740_v39 = vadd.f32 0.18741608, %v739_v34  ;;  %v1180_v22 = vadd.f32 0.18741608, %v1179_v35  ;;  %v855_v15 = vmul.f32 %v854_v54, %v2280_v28  ;;  %v1021_v43 = vmul.f32 %v1020_v14, %v2165_v12 }
  0xf0   : > { %v818_v5 = vadd.f32 0.05243302, %v817_v6  ;;  %v1229_v45 = vadd.f32 0.112945676, %v1228_v17  ;;  %v1187_v41 = vadd.f32 0.014752088, %v1186_v57  ;;  %v2303_v26 = vmul.f32 %v614_v0, %v2240_v8 }
  0xf1   : > { %v780_v11 = vadd.f32 0.18741608, %v779_v61  ;;  %v856_v50 = vadd.f32 0.0036580483, %v855_v15  ;;  %v1145_v31 = vadd.f32 0.001143296, %v1144_v21  ;;  %v741_v0 = vmul.f32 %v740_v39, %v2138_v47 }
  0xf2   : > { %2864 = vst [vmem:[#allocation25_spill] sm:$0xff] %v2303_v26  ;;  %v1220_v18 = vadd.f32 0.18741608, %v1219_v3  ;;  %v1230_v42 = vmul.f32 %v1229_v45, %v2236_v27  ;;  %v1188_v63 = vmul.f32 %v1187_v41, %v2204_v2  ;;  %v1104_v34 = vmul.f32 3.8918573e-05, %v2090_v25 }
  0xf3   : > { %v819_v35 = vmul.f32 %v818_v5, %v2260_v19  ;;  %v857_v14 = vmul.f32 %v856_v50, %v2280_v28  ;;  %v1146_v54 = vmul.f32 %v1145_v31, %v2123_v10  ;;  %v1064_v6 = vmul.f32 3.8918573e-05, %v2059_v1 }
  0xf4   : > { %v1022_v61 = vadd.f32 1.1283791, %v1021_v43  ;;  %v1231_v17 = vadd.f32 0.4994258, %v1230_v42  ;;  %v1189_v57 = vadd.f32 0.112945676, %v1188_v63  ;;  %v1181_v3 = vmul.f32 %v1180_v22, %v2204_v2 }
  0xf5   : > { %v858_v45 = vadd.f32 0.05243302, %v857_v14  ;;  %v1147_v21 = vadd.f32 0.014752088, %v1146_v54  ;;  %v1105_v41 = vadd.f32 0.001143296, %v1104_v34  ;;  %v1221_v15 = vmul.f32 %v1220_v18, %v2236_v27 }
  0xf6   : > { %v1232_v5 = vmul.f32 %v1231_v17, %v2236_v27  ;;  %v1190_v50 = vmul.f32 %v1189_v57, %v2204_v2  ;;  %v1065_v26 = vadd.f32 0.001143296, %v1064_v6  ;;  %v781_v31 = vmul.f32 %v780_v11, %v2216_v46 }
  0xf7   : > { %v820_v20 = vadd.f32 0.18741608, %v819_v35  ;;  %v1148_v39 = vmul.f32 %v1147_v21, %v2123_v10  ;;  %v1106_v43 = vmul.f32 %v1105_v41, %v2090_v25  ;;  %v1024_v34 = vmul.f32 3.8918573e-05, %v2165_v12 }
  0xf8   : > { %v2320_v42 = vadd.f32 1.0, %v1232_v5  ;;  %v1191_v22 = vadd.f32 0.4994258, %v1190_v50  ;;  %v1066_v63 = vmul.f32 %v1065_v26, %v2059_v1  ;;  %v1182_v18 = vadd.f32 1.1283791, %v1181_v3 }
  0xf9   : > { %v859_v27 = vmul.f32 %v858_v45, %v2280_v28  ;;  %v1149_v14 = vadd.f32 0.112945676, %v1148_v39  ;;  %v1107_v54 = vadd.f32 0.014752088, %v1106_v43  ;;  %v2326_v6 = vmul.f32 %v1142_v37, %v2111_v56 }
  0xfa   : > { %v2328_v11 = vadd.f32 1.1283791, %v741_v0  ;;  %v1222_v35 = vadd.f32 1.1283791, %v1221_v15  ;;  %1622 = vrcp.f32 %v2320_v42  ;;  %v2332_v17 = vmul.f32 %v1022_v61, %v2141_v48 }
  0xfb   : > { %v821_v26 = vmul.f32 %v820_v20, %v2260_v19  ;;  %v1192_v57 = vmul.f32 %v1191_v22, %v2204_v2  ;;  %v1150_v3 = vmul.f32 %v1149_v14, %v2123_v10  ;;  %v2337_v45 = vadd.f32 1.1283791, %v781_v31 }
  0xfc   : > { %v1108_v21 = vmul.f32 %v1107_v54, %v2090_v25  ;;  %v1067_v56 = vadd.f32 0.014752088, %v1066_v63  ;;  %v1025_v37 = vadd.f32 0.001143296, %v1024_v34  ;;  %v2341_v0 = vmul.f32 %v1182_v18, %v2182_v30 }
  0xfd   : > { %v860_v41 = vadd.f32 0.18741608, %v859_v27  ;;  %v2343_v15 = vadd.f32 1.0, %v1192_v57  ;;  %v1151_v48 = vadd.f32 0.4994258, %v1150_v3  ;;  %v1223_v61 = vmul.f32 %v1222_v35, %v2219_v16 }
  0xfe   : > { %v1109_v20 = vadd.f32 0.112945676, %v1108_v21  ;;  %v1068_v2 = vmul.f32 %v1067_v56, %v2059_v1  ;;  %v1026_v5 = vmul.f32 %v1025_v37, %v2165_v12  ;;  %v2348_v50 = vadd.f32 1.1283791, %v821_v26 }
  0xff   : > { %v1243_v31 = vand.u32 2147483647, %v2320_v42  ;;  %v1245_v39 = vand.u32 2147483648, %v2320_v42  ;;  %1624 = vrcp.f32 %v2343_v15  ;;  %v1152_v43 = vmul.f32 %v1151_v48, %v2123_v10 }
 0x100   : > { %v1623_v30 = vpop.eup %1622  ;;  %v1110_v22 = vmul.f32 %v1109_v20, %v2090_v25  ;;  %v1069_v63 = vadd.f32 0.112945676, %v1068_v2  ;;  %v984_v16 = vmul.f32 3.8918573e-05, %v2097_v32  ;;  %v2357_v34 = vmul.f32 %v860_v41, %v2280_v28 }
 0x101   : > { %v1235_v18 = vmul.f32 %v1623_v30, %v2320_v42  ;;  %vm1239_vm1 = vweird.f32 %v2320_v42  ;;  %v1027_v27 = vadd.f32 0.014752088, %v1026_v5  ;;  %v1203_v14 = vand.u32 2147483647, %v2343_v15 }
 0x102   : > { %v2362_v54 = vadd.f32 1.0, %v1152_v43  ;;  %v1111_v35 = vadd.f32 0.4994258, %v1110_v22  ;;  %v1070_v10 = vmul.f32 %v1069_v63, %v2059_v1  ;;  %vm2365_vm2 = vcmp.eq.f32.partialorder %v1243_v31, 8.507059e+37 }
 0x103   : > { %v1236_v26 = vsub.f32 1.0, %v1235_v18  ;;  %v1246_v3 = vor.u32 1.1754944e-38, %v1245_v39  ;;  %v1028_v21 = vmul.f32 %v1027_v27, %v2165_v12  ;;  %vm1240_vm3 = vweird.f32 %v1623_v30 }
 0x104   : > { %v1205_v56 = vand.u32 2147483648, %v2343_v15  ;;  %1626 = vrcp.f32 %v2362_v54  ;;  %v985_v37 = vadd.f32 0.001143296, %v984_v16  ;;  %v1112_v20 = vmul.f32 %v1111_v35, %v2090_v25  ;;  %vm1241_vm6 = vmor %vm1239_vm1, %vm1240_vm3 }
 0x105   : > { %v1625_v41 = vpop.eup %1624  ;;  %v1237_v48 = vmul.f32 %v1623_v30, %v1236_v26  ;;  %v1071_v2 = vadd.f32 0.4994258, %v1070_v10  ;;  %v1029_v5 = vadd.f32 0.112945676, %v1028_v21  ;;  %vm1199_vm4 = vweird.f32 %v2343_v15 }
 0x106   : > { %v1195_v31 = vmul.f32 %v1625_v41, %v2343_v15  ;;  %vm2375_vm5 = vcmp.eq.f32.partialorder %v1203_v14, 8.507059e+37  ;;  %v944_v43 = vmul.f32 3.8918573e-05, %v2067_v7  ;;  %v1163_v63 = vand.u32 2147483647, %v2362_v54 }
 0x107   : > { %v1238_v22 = vadd.f32 %v1623_v30, %v1237_v48  ;;  %v2381_v16 = vadd.f32 1.0, %v1112_v20  ;;  %v1072_v18 = vmul.f32 %v1071_v2, %v2059_v1  ;;  %vm1200_vm7 = vweird.f32 %v1625_v41 }
 0x108   : > { %v1196_v25 = vsub.f32 1.0, %v1195_v31  ;;  %v1206_v27 = vor.u32 1.1754944e-38, %v1205_v56  ;;  %v1165_v14 = vand.u32 2147483648, %v2362_v54  ;;  %v1030_v10 = vmul.f32 %v1029_v5, %v2165_v12  ;;  %vm1201_vm10 = vmor %vm1199_vm4, %vm1200_vm7 }
 0x109   : > { %v1242_v35 = vsel %vm1241_vm6, %v1623_v30, %v1238_v22  ;;  %1628 = vrcp.f32 %v2381_v16  ;;  %v986_v26 = vmul.f32 %v985_v37, %v2097_v32  ;;  %v2393_v20 = vadd.f32 1.0, %v1072_v18 }
 0x10a   : > { %v1627_v21 = vpop.eup %1626  ;;  %v1247_v1 = vsel %vm2365_vm2, %v1246_v3, %v1242_v35  ;;  %v1197_v48 = vmul.f32 %v1625_v41, %v1196_v25  ;;  %v945_v42 = vadd.f32 0.001143296, %v944_v43  ;;  %vm1159_vm8 = vweird.f32 %v2362_v54 }
 0x10b   : > { %v1248_v2 = vmul.f32 %v1247_v1, %v1223_v61  ;;  %v1155_v56 = vmul.f32 %v1627_v21, %v2362_v54  ;;  %vm2397_vm9 = vcmp.eq.f32.partialorder %v1163_v63, 8.507059e+37  ;;  %v1166_v31 = vor.u32 1.1754944e-38, %v1165_v14 }
 0x10c   : > { %v1198_v5 = vadd.f32 %v1625_v41, %v1197_v48  ;;  %v1123_v37 = vand.u32 2147483647, %v2381_v16  ;;  %1630 = vrcp.f32 %v2393_v20  ;;  %v1125_v3 = vand.u32 2147483648, %v2381_v16 }
 0x10d   : > { %v1562_v57 = vclamps-f32 %v1248_v2, 1.0  ;;  %v1156_v61 = vsub.f32 1.0, %v1155_v56  ;;  %v904_v43 = vmul.f32 3.8918573e-05, %v2037_v51  ;;  %vm1119_vm11 = vweird.f32 %v2381_v16 }
 0x10e   : > { %v1202_v22 = vsel %vm1201_vm10, %v1625_v41, %v1198_v5  ;;  %v1031_v63 = vadd.f32 0.4994258, %v1030_v10  ;;  %v987_v18 = vadd.f32 0.014752088, %v986_v26  ;;  %v946_v25 = vmul.f32 %v945_v42, %v2067_v7 }
 0x10f   : > { %v1629_v14 = vpop.eup %1628  ;;  %v1266_v35 = vadd.f32 1.0, %v1562_v57  ;;  %v1207_v1 = vsel %vm2375_vm5, %v1206_v27, %v1202_v22  ;;  %v1157_v48 = vmul.f32 %v1627_v21, %v1156_v61  ;;  %vm1160_vm12 = vweird.f32 %v1627_v21 }
 0x110   : > { %v1208_v15 = vmul.f32 %v1207_v1, %v2341_v0  ;;  %v1115_v2 = vmul.f32 %v1629_v14, %v2381_v16  ;;  %vm2414_vm13 = vcmp.eq.f32.partialorder %v1123_v37, 8.507059e+37  ;;  %v1083_v41 = vand.u32 2147483647, %v2393_v20  ;;  %vm1161_vm14 = vmor %vm1159_vm8, %vm1160_vm12 }
 0x111   : > { %v1085_v10 = vand.u32 2147483648, %v2393_v20  ;;  %v1282_v26 = vmul.f32 %v1266_v35, %v2293_v33  ;;  %v1158_v42 = vadd.f32 %v1627_v21, %v1157_v48  ;;  %v1032_v39 = vmul.f32 %v1031_v63, %v2165_v12 }
 0x112   : > { %v988_v27 = vmul.f32 %v987_v18, %v2097_v32  ;;  %v1631_v5 = vpop.eup %1630  ;;  %v1561_v57 = vclamps-f32 %v1208_v15, 1.0  ;;  %v1116_v0 = vsub.f32 1.0, %v1115_v2  ;;  %vm1120_vm15 = vweird.f32 %v1629_v14 }
 0x113   : > { %v947_v37 = vadd.f32 0.014752088, %v946_v25  ;;  %1288 = vmatpush.msrb.mxu1 %v1282_v26  ;;  %v1162_v61 = vsel %vm1161_vm14, %v1627_v21, %v1158_v42  ;;  %v1075_v22 = vmul.f32 %v1631_v5, %v2393_v20  ;;  %v2426_v1 = vadd.f32 1.0, %v1032_v39  ;;  %vm1121_vm2 = vmor %vm1119_vm11, %vm1120_vm15 }
 0x114   : > { %v905_v33 = vadd.f32 0.001143296, %v904_v43  ;;  %v1265_v35 = vadd.f32 1.0, %v1561_v57  ;;  %v1167_v12 = vsel %vm2397_vm9, %v1166_v31, %v1162_v61  ;;  %v1117_v63 = vmul.f32 %v1629_v14, %v1116_v0 }
 0x115   : > { %v989_v18 = vadd.f32 0.112945676, %v988_v27  ;;  %v1168_v48 = vmul.f32 %v1167_v12, %v2326_v6  ;;  %v1126_v54 = vor.u32 1.1754944e-38, %v1125_v3  ;;  %v1076_v15 = vsub.f32 1.0, %v1075_v22 }
 0x116   : > { %1632 = vrcp.f32 %v2426_v1  ;;  %v1281_v25 = vmul.f32 %v1265_v35, %v2258_v23  ;;  %v1118_v21 = vadd.f32 %v1629_v14, %v1117_v63  ;;  %vm1079_vm0 = vweird.f32 %v2393_v20 }
 0x117   : > { %vm1080_vm1 = vweird.f32 %v1631_v5  ;;  %v1560_v2 = vclamps-f32 %v1168_v48, 1.0  ;;  %v1077_v30 = vmul.f32 %v1631_v5, %v1076_v15  ;;  %v990_v31 = vmul.f32 %v989_v18, %v2097_v32 }
 0x118   : > { %v948_v6 = vmul.f32 %v947_v37, %v2067_v7  ;;  %1289 = vmatpush.msrb.mxu1 %v1281_v25  ;;  %v1122_v3 = vsel %vm1121_vm2, %v1629_v14, %v1118_v21  ;;  %vm2439_vm3 = vcmp.eq.f32.partialorder %v1083_v41, 8.507059e+37  ;;  %v1086_v23 = vor.u32 1.1754944e-38, %v1085_v10  ;;  %vm1081_vm4 = vmor %vm1079_vm0, %vm1080_vm1 }
 0x119   : > { %v906_v26 = vmul.f32 %v905_v33, %v2037_v51  ;;  %v1264_v42 = vadd.f32 1.0, %v1560_v2  ;;  %v1127_v39 = vsel %vm2414_vm13, %v1126_v54, %v1122_v3  ;;  %v1078_v16 = vadd.f32 %v1631_v5, %v1077_v30 }
 0x11a   : > { %v991_v27 = vadd.f32 0.4994258, %v990_v31  ;;  %v1128_v57 = vmul.f32 %v1127_v39, %v2276_v60  ;;  %v949_v14 = vadd.f32 0.112945676, %v948_v6  ;;  %v784_v0 = vmul.f32 3.8918573e-05, %v2216_v46 }
 0x11b   : > { %v907_v41 = vadd.f32 0.014752088, %v906_v26  ;;  %v1280_v10 = vmul.f32 %v1264_v42, %v2179_v29  ;;  %v1082_v61 = vsel %vm1081_vm4, %v1631_v5, %v1078_v16  ;;  %v1043_v22 = vand.u32 2147483647, %v2426_v1 }
 0x11c   : > { %v1633_v37 = vpop.eup %1632  ;;  %v992_v56 = vmul.f32 %v991_v27, %v2097_v32  ;;  %v1559_v33 = vclamps-f32 %v1128_v57, 1.0  ;;  %v1087_v60 = vsel %vm2439_vm3, %v1086_v23, %v1082_v61  ;;  %v1045_v20 = vand.u32 2147483648, %v2426_v1 }
 0x11d   : > { %v1035_v35 = vmul.f32 %v1633_v37, %v2426_v1  ;;  %1290 = vmatpush.msrb.mxu1 %v1280_v10  ;;  %v1088_v12 = vmul.f32 %v1087_v60, %v2213_v24  ;;  %v950_v29 = vmul.f32 %v949_v14, %v2067_v7  ;;  %v908_v5 = vmul.f32 %v907_v41, %v2037_v51 }
 0x11e   : > { %v2459_v63 = vadd.f32 1.0, %v992_v56  ;;  %v1263_v18 = vadd.f32 1.0, %v1559_v33  ;;  %v785_v32 = vadd.f32 0.001143296, %v784_v0  ;;  %v744_v54 = vmul.f32 3.8918573e-05, %v2138_v47 }
 0x11f   : > { %v1036_v48 = vsub.f32 1.0, %v1035_v35  ;;  %v1558_v15 = vclamps-f32 %v1088_v12, 1.0  ;;  %vm1039_vm5 = vweird.f32 %v2426_v1  ;;  %vm2465_vm6 = vcmp.eq.f32.partialorder %v1043_v22, 8.507059e+37 }
 0x120   : > { %1634 = vrcp.f32 %v2459_v63  ;;  %v1279_v24 = vmul.f32 %v1263_v18, %v2162_v9  ;;  %vm1040_vm7 = vweird.f32 %v1633_v37  ;;  %v951_v2 = vadd.f32 0.4994258, %v950_v29 }
 0x121   : > { %v1037_v21 = vmul.f32 %v1633_v37, %v1036_v48  ;;  %v1262_v30 = vadd.f32 1.0, %v1558_v15  ;;  %v1046_v31 = vor.u32 1.1754944e-38, %v1045_v20  ;;  %v909_v6 = vadd.f32 0.112945676, %v908_v5  ;;  %vm1041_vm8 = vmor %vm1039_vm5, %vm1040_vm7 }
 0x122   : > { %v824_v3 = vmul.f32 3.8918573e-05, %v2260_v19  ;;  %1291 = vmatpush.msrb.mxu1 %v1279_v24  ;;  %v952_v23 = vmul.f32 %v951_v2, %v2067_v7  ;;  %v786_v26 = vmul.f32 %v785_v32, %v2216_v46  ;;  %v745_v42 = vadd.f32 0.001143296, %v744_v54 }
 0x123   : > { %v1038_v43 = vadd.f32 %v1633_v37, %v1037_v21  ;;  %v1278_v39 = vmul.f32 %v1262_v30, %v2149_v38  ;;  %v1003_v9 = vand.u32 2147483647, %v2459_v63  ;;  %v910_v16 = vmul.f32 %v909_v6, %v2037_v51 }
 0x124   : > { %v825_v27 = vadd.f32 0.001143296, %v824_v3  ;;  %vm999_vm9 = vweird.f32 %v2459_v63  ;;  %v2480_v14 = vadd.f32 1.0, %v952_v23  ;;  %v864_v7 = vmul.f32 3.8918573e-05, %v2280_v28 }
 0x125   : > { %v1042_v57 = vsel %vm1041_vm8, %v1633_v37, %v1038_v43  ;;  %1292 = vmatpush.msrb.mxu1 %v1278_v39  ;;  %v911_v0 = vadd.f32 0.4994258, %v910_v16  ;;  %v787_v10 = vadd.f32 0.014752088, %v786_v26  ;;  %v1005_v37 = vand.u32 2147483648, %v2459_v63 }
 0x126   : > { %v1635_v41 = vpop.eup %1634  ;;  %v1047_v38 = vsel %vm2465_vm6, %v1046_v31, %v1042_v57  ;;  %v826_v1 = vmul.f32 %v825_v27, %v2260_v19  ;;  %1636 = vrcp.f32 %v2480_v14  ;;  %vm2490_vm11 = vcmp.eq.f32.partialorder %v1003_v9, 8.507059e+37 }
 0x127   : > { %v1048_v61 = vmul.f32 %v1047_v38, %v2332_v17  ;;  %v995_v22 = vmul.f32 %v1635_v41, %v2459_v63  ;;  %vm1000_vm10 = vweird.f32 %v1635_v41  ;;  %v912_v33 = vmul.f32 %v911_v0, %v2037_v51 }
 0x128   : > { %v746_v60 = vmul.f32 %v745_v42, %v2138_v47  ;;  %v865_v12 = vadd.f32 0.001143296, %v864_v7  ;;  %v827_v29 = vadd.f32 0.014752088, %v826_v1  ;;  %v963_v17 = vand.u32 2147483647, %v2480_v14  ;;  %vm1001_vm13 = vmor %vm999_vm9, %vm1000_vm10 }
 0x129   : > { %v1557_v35 = vclamps-f32 %v1048_v61, 1.0  ;;  %v996_v20 = vsub.f32 1.0, %v995_v22  ;;  %v965_v5 = vand.u32 2147483648, %v2480_v14  ;;  %v2498_v18 = vadd.f32 1.0, %v912_v33 }
 0x12a   : > { %v788_v48 = vmul.f32 %v787_v10, %v2216_v46  ;;  %v866_v15 = vmul.f32 %v865_v12, %v2280_v28  ;;  %v828_v51 = vmul.f32 %v827_v29, %v2260_v19  ;;  %v1006_v25 = vor.u32 1.1754944e-38, %v1005_v37 }
 0x12b   : > { %v1261_v32 = vadd.f32 1.0, %v1557_v35  ;;  %v997_v54 = vmul.f32 %v1635_v41, %v996_v20  ;;  %vm959_vm12 = vweird.f32 %v2480_v14  ;;  %1638 = vrcp.f32 %v2498_v18 }
 0x12c   : > { %v747_v24 = vadd.f32 0.014752088, %v746_v60  ;;  %v1637_v21 = vpop.eup %1636  ;;  %v867_v31 = vadd.f32 0.014752088, %v866_v15  ;;  %v829_v6 = vadd.f32 0.112945676, %v828_v51  ;;  %vm919_vm15 = vweird.f32 %v2498_v18 }
 0x12d   : > { %v1277_v2 = vmul.f32 %v1261_v32, %v2232_v53  ;;  %v998_v30 = vadd.f32 %v1635_v41, %v997_v54  ;;  %v955_v3 = vmul.f32 %v1637_v21, %v2480_v14  ;;  %vm2510_vm14 = vcmp.eq.f32.partialorder %v963_v17, 8.507059e+37 }
 0x12e   : > { %v966_v23 = vor.u32 1.1754944e-38, %v965_v5  ;;  %v923_v26 = vand.u32 2147483647, %v2498_v18  ;;  %v868_v53 = vmul.f32 %v867_v31, %v2280_v28  ;;  %v830_v39 = vmul.f32 %v829_v6, %v2260_v19 }
 0x12f   : > { %1293 = vmatpush.msrb.mxu1 %v1277_v2  ;;  %v1002_v42 = vsel %vm1001_vm13, %v1635_v41, %v998_v30  ;;  %v789_v9 = vadd.f32 0.112945676, %v788_v48  ;;  %v956_v16 = vsub.f32 1.0, %v955_v3  ;;  %v748_v27 = vmul.f32 %v747_v24, %v2138_v47 }
 0x130   : > { %v1007_v63 = vsel %vm2490_vm11, %v1006_v25, %v1002_v42  ;;  %v704_v57 = vmul.f32 3.8918573e-05, %v2108_v55  ;;  %v869_v38 = vadd.f32 0.112945676, %v868_v53  ;;  %v831_v0 = vadd.f32 0.4994258, %v830_v39 }
 0x131   : > { %v1008_v7 = vmul.f32 %v1007_v63, %v2289_v44  ;;  %v790_v41 = vmul.f32 %v789_v9, %v2216_v46  ;;  %v1639_v1 = vpop.eup %1638  ;;  %v957_v10 = vmul.f32 %v1637_v21, %v956_v16  ;;  %vm960_vm0 = vweird.f32 %v1637_v21 }
 0x132   : > { %v925_v61 = vand.u32 2147483648, %v2498_v18  ;;  %v749_v22 = vadd.f32 0.112945676, %v748_v27  ;;  %v915_v56 = vmul.f32 %v1639_v1, %v2498_v18  ;;  %v870_v33 = vmul.f32 %v869_v38, %v2280_v28  ;;  %vm961_vm1 = vmor %vm959_vm12, %vm960_vm0 }
 0x133   : > { %v1556_v37 = vclamps-f32 %v1008_v7, 1.0  ;;  %v705_v60 = vadd.f32 0.001143296, %v704_v57  ;;  %v958_v35 = vadd.f32 %v1637_v21, %v957_v10  ;;  %v832_v20 = vmul.f32 %v831_v0, %v2260_v19 }
 0x134   : > { %v791_v44 = vadd.f32 0.4994258, %v790_v41  ;;  %v750_v12 = vmul.f32 %v749_v22, %v2138_v47  ;;  %v916_v17 = vsub.f32 1.0, %v915_v56  ;;  %vm920_vm2 = vweird.f32 %v1639_v1 }
 0x135   : > { %v1260_v29 = vadd.f32 1.0, %v1556_v37  ;;  %v871_v5 = vadd.f32 0.4994258, %v870_v33  ;;  %v962_v48 = vsel %vm961_vm1, %v1637_v21, %v958_v35  ;;  %v2531_v32 = vadd.f32 1.0, %v832_v20  ;;  %vm921_vm3 = vmor %vm919_vm15, %vm920_vm2 }
 0x136   : > { %v792_v54 = vmul.f32 %v791_v44, %v2216_v46  ;;  %v751_v15 = vadd.f32 0.4994258, %v750_v12  ;;  %v967_v19 = vsel %vm2510_vm14, %v966_v23, %v962_v48  ;;  %v917_v25 = vmul.f32 %v1639_v1, %v916_v17 }
 0x137   : > { %v1276_v51 = vmul.f32 %v1260_v29, %v2169_v58  ;;  %v872_v24 = vmul.f32 %v871_v5, %v2280_v28  ;;  %v2540_v14 = vmul.f32 %v2337_v45, %v2193_v36  ;;  %v968_v2 = vmul.f32 %v967_v19, %v2268_v40 }
 0x138   : > { %1640 = vrcp.f32 %v2531_v32  ;;  %v706_v21 = vmul.f32 %v705_v60, %v2108_v55  ;;  %v862_v46 = vadd.f32 1.1283791, %v2357_v34  ;;  %v918_v58 = vadd.f32 %v1639_v1, %v917_v25 }
 0x139   : > { %1294 = vmatpush.msrb.mxu1 %v1276_v51  ;;  %v2546_v30 = vadd.f32 1.0, %v872_v24  ;;  %v2548_v31 = vadd.f32 1.0, %v792_v54  ;;  %v2552_v28 = vmul.f32 %v2348_v50, %v2243_v52  ;;  %v1555_v36 = vclamps-f32 %v968_v2, 1.0 }
 0x13a   : > { %vm924_vm4 = vcmp.eq.f32.partialorder %v923_v26, 8.507059e+37  ;;  %v926_v40 = vor.u32 1.1754944e-38, %v925_v61  ;;  %v922_v45 = vsel %vm921_vm3, %v1639_v1, %v918_v58  ;;  %v843_v34 = vand.u32 2147483647, %v2531_v32 }
 0x13b   : > { %1642 = vrcp.f32 %v2546_v30  ;;  %v752_v6 = vmul.f32 %v751_v15, %v2138_v47  ;;  %v1259_v3 = vadd.f32 1.0, %v1555_v36  ;;  %v707_v23 = vadd.f32 0.014752088, %v706_v21 }
 0x13c   : > { %v927_v43 = vsel %vm924_vm4, %v926_v40, %v922_v45  ;;  %v664_v52 = vmul.f32 3.8918573e-05, %v2072_v13  ;;  %v2562_v50 = vmul.f32 %v862_v46, %v2265_v59  ;;  %v845_v26 = vand.u32 2147483648, %v2531_v32 }
 0x13d   : > { %v928_v18 = vmul.f32 %v927_v43, %v2202_v62  ;;  %1644 = vrcp.f32 %v2548_v31  ;;  %v1275_v53 = vmul.f32 %v1259_v3, %v2156_v4  ;;  %v883_v39 = vand.u32 2147483647, %v2546_v30 }
 0x13e   : > { %v1641_v42 = vpop.eup %1640  ;;  %v885_v47 = vand.u32 2147483648, %v2546_v30  ;;  %vm839_vm5 = vweird.f32 %v2531_v32  ;;  %vm2572_vm6 = vcmp.eq.f32.partialorder %v843_v34, 8.507059e+37  ;;  %v2576_v62 = vadd.f32 1.0, %v752_v6 }
 0x13f   : > { %v1554_v9 = vclamps-f32 %v928_v18, 1.0  ;;  %v835_v63 = vmul.f32 %v1641_v42, %v2531_v32  ;;  %1295 = vmatpush.msrb.mxu1 %v1275_v53  ;;  %vm879_vm7 = vweird.f32 %v2546_v30  ;;  %v803_v4 = vand.u32 2147483647, %v2548_v31 }
 0x140   : > { %v805_v16 = vand.u32 2147483648, %v2548_v31  ;;  %v708_v27 = vmul.f32 %v707_v23, %v2108_v55  ;;  %v665_v57 = vadd.f32 0.001143296, %v664_v52  ;;  %v846_v41 = vor.u32 1.1754944e-38, %v845_v26 }
 0x141   : > { %v1643_v7 = vpop.eup %1642  ;;  %v1258_v38 = vadd.f32 1.0, %v1554_v9  ;;  %v836_v0 = vsub.f32 1.0, %v835_v63  ;;  %1646 = vrcp.f32 %v2576_v62  ;;  %vm2584_vm8 = vcmp.eq.f32.partialorder %v883_v39, 8.507059e+37  ;;  %v2887_v39 = vld [vmem:[#allocation17_spill] sm:$0xff]  ;;  %v2888_v9 = vld [vmem:[#allocation23_spill] sm:$0xff] }
 0x142   : > { %v875_v1 = vmul.f32 %v1643_v7, %v2546_v30  ;;  %v886_v61 = vor.u32 1.1754944e-38, %v885_v47  ;;  %vm840_vm9 = vweird.f32 %v1641_v42  ;;  %vm799_vm10 = vweird.f32 %v2548_v31 }
 0x143   : > { %v1645_v22 = vpop.eup %1644  ;;  %v1274_v37 = vmul.f32 %v1258_v38, %v2144_v49  ;;  %v837_v56 = vmul.f32 %v1641_v42, %v836_v0  ;;  %v709_v33 = vadd.f32 0.112945676, %v708_v27  ;;  %v666_v60 = vmul.f32 %v665_v57, %v2072_v13  ;;  %vm841_vm13 = vmor %vm839_vm5, %vm840_vm9 }
 0x144   : > { %v876_v35 = vsub.f32 1.0, %v875_v1  ;;  %vm880_vm11 = vweird.f32 %v1643_v7  ;;  %v795_v20 = vmul.f32 %v1645_v22, %v2548_v31  ;;  %vm2592_vm12 = vcmp.eq.f32.partialorder %v803_v4, 8.507059e+37 }
 0x145   : > { %v806_v12 = vor.u32 1.1754944e-38, %v805_v16  ;;  %1296 = vmatpush.msrb.mxu1 %v1274_v37  ;;  %v838_v29 = vadd.f32 %v1641_v42, %v837_v56  ;;  %v763_v17 = vand.u32 2147483647, %v2576_v62  ;;  %v710_v5 = vmul.f32 %v709_v33, %v2108_v55  ;;  %vm881_vm15 = vmor %vm879_vm7, %vm880_vm11 }
 0x146   : > { %v667_v49 = vadd.f32 0.014752088, %v666_v60  ;;  %v877_v48 = vmul.f32 %v1643_v7, %v876_v35  ;;  %v796_v54 = vsub.f32 1.0, %v795_v20  ;;  %v765_v15 = vand.u32 2147483648, %v2576_v62  ;;  %v2891_v35 = vld [vmem:[#allocation24_spill] sm:$0xff] }
 0x147   : > { %v624_v51 = vmul.f32 3.8918573e-05, %v2240_v8  ;;  %v1647_v19 = vpop.eup %1646  ;;  %v842_v25 = vsel %vm841_vm13, %v1641_v42, %v838_v29  ;;  %vm800_vm14 = vweird.f32 %v1645_v22  ;;  %v711_v24 = vadd.f32 0.4994258, %v710_v5  ;;  %v2892_v29 = vld [vmem:[#allocation20_spill] sm:$0xff] }
 0x148   : > { %v668_v2 = vmul.f32 %v667_v49, %v2072_v13  ;;  %v878_v21 = vadd.f32 %v1643_v7, %v877_v48  ;;  %v847_v46 = vsel %vm2572_vm6, %v846_v41, %v842_v25  ;;  %v797_v58 = vmul.f32 %v1645_v22, %v796_v54  ;;  %vm801_vm1 = vmor %vm799_vm10, %vm800_vm14  ;;  %v2889_v41 = vld [vmem:[#allocation25_spill] sm:$0xff]  ;;  %v2893_v54 = vld [vmem:[#allocation19_spill] sm:$0xff] }
 0x149   : > { %v755_v36 = vmul.f32 %v1647_v19, %v2576_v62  ;;  %v848_v32 = vmul.f32 %v847_v46, %v2552_v28  ;;  %vm760_vm0 = vweird.f32 %v1647_v19  ;;  %v712_v40 = vmul.f32 %v711_v24, %v2108_v55 }
 0x14a   : > { %v669_v45 = vadd.f32 0.112945676, %v668_v2  ;;  %v882_v34 = vsel %vm881_vm15, %v1643_v7, %v878_v21  ;;  %v798_v6 = vadd.f32 %v1645_v22, %v797_v58  ;;  %v625_v43 = vadd.f32 0.001143296, %v624_v51  ;;  %v2894_v51 = vld [vmem:[#allocation16_spill] sm:$0xff] }
 0x14b   : > { %v756_v3 = vsub.f32 1.0, %v755_v36  ;;  %v887_v23 = vsel %vm2584_vm8, %v886_v61, %v882_v34  ;;  %v1552_v52 = vclamps-f32 %v848_v32, 1.0  ;;  %v2617_v30 = vadd.f32 1.0, %v712_v40  ;;  %v1326_v34 = vld [vmem:[%s2824_s5 + $0x78] sm:$0xff] }
 0x14c   : > { %v670_v28 = vmul.f32 %v669_v45, %v2072_v13  ;;  %v888_v18 = vmul.f32 %v887_v23, %v2562_v50  ;;  %v802_v26 = vsel %vm801_vm1, %v1645_v22, %v798_v6  ;;  %v626_v53 = vmul.f32 %v625_v43, %v2240_v8  ;;  %v2890_v22 = vld [vmem:[#allocation22_spill] sm:$0xff]  ;;  %1331 = vmatpush.msrb.mxu2 %v1326_v34 }
 0x14d   : > { %v757_v42 = vmul.f32 %v1647_v19, %v756_v3  ;;  %v743_v47 = vmul.f32 %v2328_v11, %v2887_v39  ;;  %v585_v63 = vmul.f32 0.5, %v2888_v9  ;;  %v807_v59 = vsel %vm2592_vm12, %v806_v12, %v802_v26  ;;  %v1325_v6 = vld [vmem:[%s2824_s5 + $0x70] sm:$0xff]  ;;  %v2895_v26 = vld [vmem:[#allocation15_spill] sm:$0xff] }
 0x14e   : > { %1648 = vrcp.f32 %v2617_v30  ;;  %v1553_v31 = vclamps-f32 %v888_v18, 1.0  ;;  %v808_v4 = vmul.f32 %v807_v59, %v2540_v14  ;;  %vm759_vm2 = vweird.f32 %v2576_v62  ;;  %1332 = vmatpush.msrb.mxu2 %v1325_v6  ;;  %v1313_v6 = vld [vmem:[%s2824_s5 + $0x10] sm:$0xff] }
 0x14f   : > { %v758_v16 = vadd.f32 %v1647_v19, %v757_v42  ;;  %vm761_vm3 = vmor %vm759_vm2, %vm760_vm0  ;;  %vm764_vm4 = vcmp.eq.f32.partialorder %v763_v17, 8.507059e+37  ;;  %v766_v50 = vor.u32 1.1754944e-38, %v765_v15  ;;  %v671_v27 = vadd.f32 0.4994258, %v670_v28 }
 0x150   : > { %v627_v57 = vadd.f32 0.014752088, %v626_v53  ;;  %v1257_v11 = vadd.f32 1.0, %v1553_v31  ;;  %v1256_v7 = vadd.f32 1.0, %v1552_v52  ;;  %v1551_v38 = vclamps-f32 %v808_v4, 1.0  ;;  %v1324_v52 = vld [vmem:[%s2824_s5 + $0x68] sm:$0xff] }
 0x151   : > { %v762_v0 = vsel %vm761_vm3, %v1647_v19, %v758_v16  ;;  %v616_v1 = vadd.f32 0.0036580483, %v2889_v41  ;;  %v672_v61 = vmul.f32 %v671_v27, %v2072_v13  ;;  %v584_v37 = vmul.f32 0.5, %v2890_v22  ;;  %1333 = vmatpush.msrb.mxu2 %v1324_v52  ;;  %v1322_v4 = vld [vmem:[%s2824_s5 + $0x58] sm:$0xff] }
 0x152   : > { %v767_v10 = vsel %vm764_vm4, %v766_v50, %v762_v0  ;;  %v628_v14 = vmul.f32 %v627_v57, %v2240_v8  ;;  %v1273_v62 = vmul.f32 %v1257_v11, %v585_v63  ;;  %v1255_v56 = vadd.f32 1.0, %v1551_v38  ;;  %v2896_v0 = vld [vmem:[#allocation14_spill] sm:$0xff] }
 0x153   : > { %v768_v33 = vmul.f32 %v767_v10, %v743_v47  ;;  %v701_v20 = vmul.f32 %v2891_v35, %v2108_v55  ;;  %v2637_v44 = vadd.f32 1.0, %v672_v61  ;;  %v583_v17 = vmul.f32 0.5, %v2892_v29  ;;  %v1320_v61 = vld [vmem:[%s2824_s5 + $0x48] sm:$0xff]  ;;  %v1318_v29 = vld [vmem:[%s2824_s5 + $0x38] sm:$0xff] }
 0x154   : > { %v1649_v60 = vpop.eup %1648  ;;  %v629_v12 = vadd.f32 0.112945676, %v628_v14  ;;  %1297 = vmatpush.msrb.mxu1 %v1273_v62  ;;  %v1272_v5 = vmul.f32 %v1256_v7, %v584_v37  ;;  %v660_v15 = vadd.f32 0.18741608, %v2893_v54  ;;  %v582_v19 = vmul.f32 0.5, %v2894_v51  ;;  %v1321_v7 = vld [vmem:[%s2824_s5 + $0x50] sm:$0xff] }
 0x155   : > { %v1550_v49 = vclamps-f32 %v768_v33, 1.0  ;;  %v715_v48 = vmul.f32 %v1649_v60, %v2617_v30  ;;  %v617_v25 = vmul.f32 %v616_v1, %v2240_v8  ;;  %1650 = vrcp.f32 %v2637_v44  ;;  %v2897_v37 = vld [vmem:[#allocation13_spill] sm:$0xff]  ;;  %v2898_v51 = vld [vmem:[#allocation12_spill] sm:$0xff] }
 0x156   : > { %1298 = vmatpush.msrb.mxu1 %v1272_v5  ;;  %v1271_v55 = vmul.f32 %v1255_v56, %v583_v17  ;;  %v630_v21 = vmul.f32 %v629_v12, %v2240_v8  ;;  %v702_v46 = vadd.f32 1.1283791, %v701_v20  ;;  %v723_v58 = vand.u32 2147483647, %v2617_v30 }
 0x157   : > { %v1254_v24 = vadd.f32 1.0, %v1550_v49  ;;  %v716_v2 = vsub.f32 1.0, %v715_v48  ;;  %v725_v36 = vand.u32 2147483648, %v2617_v30  ;;  %vm720_vm5 = vweird.f32 %v1649_v60  ;;  %v1317_v48 = vld [vmem:[%s2824_s5 + $0x30] sm:$0xff] }
 0x158   : > { %1299 = vmatpush.msrb.mxu1 %v1271_v55  ;;  %v631_v45 = vadd.f32 0.4994258, %v630_v21  ;;  %v618_v3 = vadd.f32 0.05243302, %v617_v25  ;;  %vm719_vm6 = vweird.f32 %v2617_v30  ;;  %v661_v18 = vmul.f32 %v660_v15, %v2072_v13  ;;  %v1323_v30 = vld [vmem:[%s2824_s5 + $0x60] sm:$0xff]  ;;  %v1316_v55 = vld [vmem:[%s2824_s5 + $0x28] sm:$0xff] }
 0x159   : > { %v1270_v32 = vmul.f32 %v1254_v24, %v582_v19  ;;  %v717_v40 = vmul.f32 %v1649_v60, %v716_v2  ;;  %v703_v42 = vmul.f32 %v702_v46, %v2895_v26  ;;  %vm721_vm7 = vmor %vm719_vm6, %vm720_vm5  ;;  %v726_v53 = vor.u32 1.1754944e-38, %v725_v36  ;;  %1334 = vmatpush.msrb.mxu2 %v1323_v30  ;;  %v1315_v46 = vld [vmem:[%s2824_s5 + $0x20] sm:$0xff]  ;;  %v1312_v26 = vld [vmem:[%s2824_s5 + $0x8] sm:$0xff] }
 0x15a   : > { %v632_v23 = vmul.f32 %v631_v45, %v2240_v8  ;;  %vm724_vm8 = vcmp.eq.f32.partialorder %v723_v58, 8.507059e+37  ;;  %v619_v63 = vmul.f32 %v618_v3, %v2240_v8  ;;  %v662_v16 = vadd.f32 1.1283791, %v661_v18  ;;  %v2899_v58 = vld [vmem:[#allocation21_spill] sm:$0xff]  ;;  %v1314_v45 = vld [vmem:[%s2824_s5 + $0x18] sm:$0xff]  ;;  %v382_v18 = vld [vmem:[%s2822_s3] sm:$0xff] }
 0x15b   : > { %1300 = vmatpush.msrb.mxu1 %v1270_v32  ;;  %v718_v43 = vadd.f32 %v1649_v60, %v717_v40  ;;  %v1651_v28 = vpop.eup %1650  ;;  %v685_v50 = vand.u32 2147483648, %v2637_v44  ;;  %v683_v11 = vand.u32 2147483647, %v2637_v44  ;;  %1335 = vmatpush.msrb.mxu2 %v1322_v4  ;;  %v581_v41 = vmul.f32 0.5, %v2896_v0  ;;  %v1404_v0 = vld [vmem:[%s2826_s7 + $0x48] sm:$0xff] }
 0x15c   : > { %v675_v47 = vmul.f32 %v1651_v28, %v2637_v44  ;;  %v2662_v9 = vadd.f32 1.0, %v632_v23  ;;  %vm680_vm9 = vweird.f32 %v1651_v28  ;;  %v620_v38 = vadd.f32 0.18741608, %v619_v63  ;;  %v1620_v63 = vld [vmem:[%s2825_s6] ss:$0 sm:$0xff] }
 0x15d   : > { %v722_v39 = vsel %vm721_vm7, %v1649_v60, %v718_v43  ;;  %vm679_vm10 = vweird.f32 %v2637_v44  ;;  %v686_v14 = vor.u32 1.1754944e-38, %v685_v50  ;;  %1336 = vmatpush.msrb.mxu2 %v1321_v7  ;;  %v663_v62 = vmul.f32 %v662_v16, %v2897_v37  ;;  %v1319_v60 = vld [vmem:[%s2824_s5 + $0x40] sm:$0xff]  ;;  %v2900_v43 = vld [vmem:[#allocation18_spill] sm:$0xff] }
 0x15e   : > { %v727_v59 = vsel %vm724_vm8, %v726_v53, %v722_v39  ;;  %v676_v31 = vsub.f32 1.0, %v675_v47  ;;  %1652 = vrcp.f32 %v2662_v9  ;;  %vm681_vm11 = vmor %vm679_vm10, %vm680_vm9  ;;  %vm684_vm12 = vcmp.eq.f32.partialorder %v683_v11, 8.507059e+37  ;;  %v1286_v53 = vpop.permute.xlu1 %1285  ;;  %v1407_v50 = vld [vmem:[%s2826_s7 + $0x60] sm:$0xff]  ;;  %v1405_v7 = vld [vmem:[%s2826_s7 + $0x50] sm:$0xff] }
 0x15f   : > { %v728_v13 = vmul.f32 %v727_v59, %v703_v42  ;;  %v621_v35 = vmul.f32 %v620_v38, %v2240_v8  ;;  %1337 = vmatpush.msrb.mxu2 %v1320_v61  ;;  %v645_v49 = vand.u32 2147483648, %v2662_v9  ;;  %v643_v15 = vand.u32 2147483647, %v2662_v9  ;;  %v1311_v42 = vld [vmem:[%s2824_s5] sm:$0xff]  ;;  %v1410_v59 = vld [vmem:[%s2826_s7 + $0x78] sm:$0xff] }
 0x160   : > { %v677_v57 = vmul.f32 %v1651_v28, %v676_v31  ;;  %v580_v19 = vmul.f32 0.5, %v2898_v51  ;;  %vm639_vm14 = vweird.f32 %v2662_v9  ;;  %v579_v23 = vmul.f32 0.5, %v2900_v43  ;;  %1415 = vmatpush.msra.mxu3 %v1410_v59  ;;  %v1408_v31 = vld [vmem:[%s2826_s7 + $0x68] sm:$0xff] }
 0x161   : > { %v1549_v27 = vclamps-f32 %v728_v13, 1.0  ;;  %1338 = vmatpush.msrb.mxu2 %v1319_v60  ;;  %v622_v8 = vadd.f32 1.1283791, %v621_v35  ;;  %v646_v21 = vor.u32 1.1754944e-38, %v645_v49  ;;  %vm644_vm0 = vcmp.eq.f32.partialorder %v643_v15, 8.507059e+37  ;;  %v1409_v13 = vld [vmem:[%s2826_s7 + $0x70] sm:$0xff] }
 0x162   : > { %v678_v10 = vadd.f32 %v1651_v28, %v677_v57  ;;  %1416 = vmatpush.msra.mxu3 %v1409_v13  ;;  %v1406_v57 = vld [vmem:[%s2826_s7 + $0x58] sm:$0xff]  ;;  %v1395_v15 = vld [vmem:[%s2826_s7] sm:$0xff] }
 0x163   : > { %v1253_v1 = vadd.f32 1.0, %v1549_v27  ;;  %1339 = vmatpush.msrb.mxu2 %v1318_v29  ;;  %v623_v36 = vmul.f32 %v622_v8, %v2899_v58 }
 0x164   : > { %v1653_v22 = vpop.eup %1652  ;;  %v682_v33 = vsel %vm681_vm11, %v1651_v28, %v678_v10  ;;  %1417 = vmatpush.msra.mxu3 %v1408_v31 }
 0x165   : > { %v1269_v56 = vmul.f32 %v1253_v1, %v581_v41  ;;  %v687_v20 = vsel %vm684_vm12, %v686_v14, %v682_v33  ;;  %v635_v44 = vmul.f32 %v1653_v22, %v2662_v9  ;;  %vm640_vm13 = vweird.f32 %v1653_v22  ;;  %1340 = vmatpush.msrb.mxu2 %v1317_v48  ;;  %v1656_v9 = vld [vmem:[%s1898_s28] sm:$0xff]  ;;  %v1402_v14 = vld [vmem:[%s2826_s7 + $0x38] sm:$0xff]  ;;  %s1565_s28 = sshll.u32 %s1827_s13, 3  ;;  %s1438_s13 = scalar_lea.sflag [#allocation5], %s1892_s23 }
 0x166   : > { %v688_v12 = vmul.f32 %v687_v20, %v663_v62  ;;  %vm641_vm15 = vmor %vm639_vm14, %vm640_vm13  ;;  %1418 = vmatpush.msra.mxu3 %v1407_v50  ;;  %v1403_v1 = vld [vmem:[%s2826_s7 + $0x40] sm:$0xff]  ;;  %v1401_v62 = vld [vmem:[%s2826_s7 + $0x30] sm:$0xff]  ;;  %s1448_s17 = scalar_lea.hbm %s2828_s9, %s1565_s28 }
 0x167   : > { %1301 = vmatpush.msrb.mxu1 %v1269_v56  ;;  %v636_v17 = vsub.f32 1.0, %v635_v44  ;;  %1341 = vmatpush.msrb.mxu2 %v1316_v55  ;;  %v1400_v33 = vld [vmem:[%s2826_s7 + $0x28] sm:$0xff]  ;;  %v1399_v20 = vld [vmem:[%s2826_s7 + $0x20] sm:$0xff]  ;;  %s1452_s25 = sshll.u32 %s1448_s17, 4  ;;  %s1453_s25 = int_to_ptr.hbm [resolvable:$true] %s1452_s25 }
 0x168   : > { %v1548_v5 = vclamps-f32 %v688_v12, 1.0  ;;  %1419 = vmatpush.msra.mxu3 %v1406_v57  ;;  %v1398_v12 = vld [vmem:[%s2826_s7 + $0x18] sm:$0xff]  ;;  %v1396_v48 = vld [vmem:[%s2826_s7 + $0x8] sm:$0xff]  ;;  %s1701_s19 = sshra.s32 %s1453_s25, 4  ;;  %s1702_s19 = int_to_ptr.hbm [resolvable:$true] %s1701_s19 }
 0x169   : > { %v637_v54 = vmul.f32 %v1653_v22, %v636_v17  ;;  %1342 = vmatpush.msrb.mxu2 %v1315_v46  ;;  %s1703_s26 = scalar_lea.hbm %s1702_s19, 8  ;;  %p1708_p0 = scmp.lt.s32.totalorder %s1702_s19, %s2828_s9 }
 0x16a   : > { %v1252_v25 = vadd.f32 1.0, %v1548_v5  ;;  %1420 = vmatpush.msra.mxu3 %v1405_v7  ;;  %v1397_v5 = vld [vmem:[%s2826_s7 + $0x10] sm:$0xff]  ;;  %p1704_p6 = scmp.ne.s32.totalorder %s1702_s19, %s1703_s26  ;;  %p1709_p1 = scmp.lt.s32.totalorder %s1707_s11, %s1703_s26 }
 0x16b   : > { %v638_v24 = vadd.f32 %v1653_v22, %v637_v54  ;;  %1343 = vmatpush.msrb.mxu2 %v1314_v45 }
 0x16c   : > { %v1268_v2 = vmul.f32 %v1252_v25, %v580_v19  ;;  %1421 = vmatpush.msra.mxu3 %v1404_v0  ;;  %p1705_p9 = pnand %p1704_p6, %p1856_p11  ;;  %p1710_p3 = por %p1709_p1, %p1708_p0 }
 0x16d   : > { %v642_v32 = vsel %vm641_vm15, %v1653_v22, %v638_v24  ;;  %1344 = vmatpush.msrb.mxu2 %v1313_v6 }
 0x16e   : > { %1302 = vmatpush.msrb.mxu1 %v1268_v2  ;;  %v647_v40 = vsel %vm644_vm0, %v646_v21, %v642_v32  ;;  %1422 = vmatpush.msra.mxu3 %v1403_v1  ;;  %p1706_p13 = pneg %p1705_p9 }
 0x16f   : > { %v648_v34 = vmul.f32 %v647_v40, %v623_v36  ;;  %1345 = vmatpush.msrb.mxu2 %v1312_v26 }
 0x170   : > { %1423 = vmatpush.msra.mxu3 %v1402_v14  ;;  %p1711_p4 = pnand %p1710_p3, %p1706_p13 }
 0x171   : > { %v1547_v3 = vclamps-f32 %v648_v34, 1.0  ;;  %1346 = vmatpush.msrb.mxu2 %v1311_v42  ;;  %v1621_v42 = vld [vmem:[%s2827_s8] ss:$0 sm:$0xff] }
 0x172   : > { %1424 = vmatpush.msra.mxu3 %v1401_v62 }
 0x173   : > { %v1251_v52 = vadd.f32 1.0, %v1547_v3 }
 0x174   : > { %1425 = vmatpush.msra.mxu3 %v1400_v33 }
 0x175   : > { %v1267_v28 = vmul.f32 %v1251_v52, %v579_v23 }
 0x176   : > { %1426 = vmatpush.msra.mxu3 %v1399_v20 }
 0x177   : > { %1303 = vmatpush.msrb.mxu1 %v1267_v28 }
 0x178   : > { %1304 = vmatmul.f32.vlgmr.msrb.gmra.mxu1 %v382_v18  ;;  %1427 = vmatpush.msra.mxu3 %v1398_v12 }
 0x17a   : > { %1428 = vmatpush.msra.mxu3 %v1397_v5 }
 0x17c   : > { %1429 = vmatpush.msra.mxu3 %v1396_v48 }
 0x17e   : > { %1430 = vmatpush.msra.mxu3 %v1395_v15 }
 0x1f5   : > { %v1305_v39 = vpop.f32.mrf.mxu1 }
 0x1f6   : > { %v1306_v47 = vadd.f32 %v1305_v39, %v1286_v53 }
 0x1f8   : > { %v2722_v30 = vadd.f32 %v1656_v9, %v1306_v47 }
 0x1fa   : > { %1347 = vmatmul.f32.vlgmr.msrb.gmra.mxu2 %v2722_v30 }
 0x27d   : > { %v1348_v4 = vpop.f32.mrf.mxu2 }
 0x27e   : > { %v2737_v16 = vadd.f32 %v1620_v63, %v1348_v4 }
 0x280   : > { %v1352_v27 = vmul.f32 0.70710677, %v2737_v16  ;;  %v1351_v28 = vmul.f32 0.5, %v2737_v16 }
 0x282   : > { %v1353_v11 = vmul.f32 %v1352_v27, %v1352_v27 }
 0x284   : > { %v1354_v38 = vmin.f32 %v1353_v11, 16.0 }
 0x286   : > { %v1355_v41 = vmul.f32 2.1237322e-06, %v1354_v38  ;;  %v1366_v10 = vmul.f32 3.8918573e-05, %v1354_v38 }
 0x288   : > { %v1356_v61 = vadd.f32 0.00028619796, %v1355_v41  ;;  %v1367_v22 = vadd.f32 0.001143296, %v1366_v10 }
 0x28a   : > { %v1357_v37 = vmul.f32 %v1356_v61, %v1354_v38  ;;  %v1368_v56 = vmul.f32 %v1367_v22, %v1354_v38 }
 0x28c   : > { %v1369_v60 = vadd.f32 0.014752088, %v1368_v56  ;;  %v1358_v35 = vadd.f32 0.0036580483, %v1357_v37 }
 0x28e   : > { %v1370_v44 = vmul.f32 %v1369_v60, %v1354_v38  ;;  %v1359_v17 = vmul.f32 %v1358_v35, %v1354_v38 }
 0x290   : > { %v1371_v29 = vadd.f32 0.112945676, %v1370_v44  ;;  %v1360_v54 = vadd.f32 0.05243302, %v1359_v17 }
 0x292   : > { %v1372_v49 = vmul.f32 %v1371_v29, %v1354_v38  ;;  %v1361_v25 = vmul.f32 %v1360_v54, %v1354_v38 }
 0x294   : > { %v1373_v8 = vadd.f32 0.4994258, %v1372_v49  ;;  %v1362_v55 = vadd.f32 0.18741608, %v1361_v25 }
 0x296   : > { %v1374_v51 = vmul.f32 %v1373_v8, %v1354_v38  ;;  %v1363_v2 = vmul.f32 %v1362_v55, %v1354_v38 }
 0x298   : > { %v1375_v19 = vadd.f32 1.0, %v1374_v51  ;;  %v1364_v36 = vadd.f32 1.1283791, %v1363_v2 }
 0x29a   : > { %1654 = vrcp.f32 %v1375_v19  ;;  %v1387_v58 = vand.u32 2147483648, %v1375_v19  ;;  %v1385_v40 = vand.u32 2147483647, %v1375_v19  ;;  %vm1381_vm2 = vweird.f32 %v1375_v19 }
 0x29b   : > { %v1365_v6 = vmul.f32 %v1364_v36, %v1352_v27 }
 0x29c   : > { %v1388_v34 = vor.u32 1.1754944e-38, %v1387_v58  ;;  %vm1386_vm4 = vcmp.eq.f32.partialorder %v1385_v40, 8.507059e+37 }
 0x2a0   : > { %v1655_v24 = vpop.eup %1654 }
 0x2a1   : > { %v1377_v21 = vmul.f32 %v1655_v24, %v1375_v19  ;;  %vm1382_vm1 = vweird.f32 %v1655_v24 }
 0x2a2   : > { %vm1383_vm3 = vmor %vm1381_vm2, %vm1382_vm1 }
 0x2a3   : > { %v1378_v46 = vsub.f32 1.0, %v1377_v21 }
 0x2a5   : > { %v1379_v32 = vmul.f32 %v1655_v24, %v1378_v46 }
 0x2a7   : > { %v1380_v45 = vadd.f32 %v1655_v24, %v1379_v32 }
 0x2a9   : > { %v1384_v3 = vsel %vm1383_vm3, %v1655_v24, %v1380_v45 }
 0x2aa   : > { %v1389_v43 = vsel %vm1386_vm4, %v1388_v34, %v1384_v3 }
 0x2ab   : > { %v1390_v23 = vmul.f32 %v1389_v43, %v1365_v6 }
 0x2ad   : > { %v1563_v52 = vclamps-f32 %v1390_v23, 1.0 }
 0x2af   : > { %v1393_v18 = vadd.f32 1.0, %v1563_v52 }
 0x2b1   : > { %v1394_v26 = vmul.f32 %v1393_v18, %v1351_v28 }
 0x2b3   : > { %1431 = vmatmul.f32.vlgmr.msra.gmra.mxu3 %v1394_v26 }
 0x336   : > { %v1432_v53 = vpop.f32.mrf.mxu3 }
 0x337   : > { %v1433_v39 = vadd.f32 %v1621_v42, %v1432_v53 }
 0x339   : > { %v1435_v47 = vadd.f32 %v1433_v39, %v2722_v30 }
 0x33b   : > { %1436 = vst [vmem:[%s349_s20] sm:$0xff] %v1435_v47 }
 0x33c   : > { %1714 = shalt.err (!%p1711_p4)
}
 0x33d   : > { %1572 = dma.vmem_to_hbm [thread:$0]  (%p1856_p11), %s1451_s24, 128, %s1453_s25, %s1438_s13  }
 0x33e PF: > { %s1464_s23 = sand.u32 1, %s1741_s30   ;;  %p2901_p7 = scmp.ge.s32.totalorder %s1753_s12, 2 }
 0x33f   : > { %s1465_s29 = scalar_lea.sflag [#allocation5], %s1464_s23 }
 0x340   : > { %p1579_p5 = pnand %p2901_p7, %p1860_p12 }
 0x342   : > { %p1580_p8 = pneg %p1579_p5 }
 0x344   : > { %1736 = dma.done.wait (%p1580_p8), %s1465_s29, 128  }
 0x345   : > { %1738 = vsyncadd (%p1580_p8), %s1465_s29, 4294967168  ;;  %s2902_s12 = sld [smem:[#allocation10_spill]]  ;;  %s2905_s30 = smov %s1745_s10 }
 0x346   : > { %s2903_s14 = sld [smem:[#allocation9_spill]] }
 0x347   : > { %s2904_s11 = sld [smem:[#allocation11_spill]] }
 0x34b   : > { %p22_p10 = scmp.ge.s32.totalorder %s2902_s12, 4  }
 0x34c   : > { %s2906_s10 = smov %s2903_s14 }
 0x34d   :  { %24 = sbr.rel (!%p22_p10) target bundleno = 5 (0x5), region = 101 }
 0x352   :  { %1471 = vsyncpa [#allocation4], 1 }
 0x353   :  { %1473 = vsyncpa [#allocation4 + $0x1], 1 }
 0x354   :  { %1474 = vsyncpa [#allocation5], 1 }
 0x355   :  { %1476 = vsyncpa [#allocation5 + $0x1], 1 }

</bundles_post_ra>
